<compile_context>
chip_gen: v5e
topology: v5e:2x2
jax: 0.10.0
libtpu: 0.0.40
codegen_flags: <defaults>
</compile_context>

<pallas_src>
import jax
import jax.numpy as jnp
from jax import lax
from jax.experimental import pallas as pl
from jax.experimental.pallas import tpu as pltpu


def _round_up(x, m):
    return ((x + m - 1) // m) * m


def self_attention_pallas(x_nchw, gamma, wq, bq, wk, bk, wv, bv):
    f32 = jnp.float32
    bf16 = jnp.bfloat16

    B, C, W, H = x_nchw.shape
    N = W * H
    N_pad = _round_up(N, 128)                 # lane-dense output, unmasked vst
    TQ = 256 if (N_pad % 512 == 0) else 128   # larger tile amortizes step overhead
    num_t = N_pad // TQ
    mask_pad = (N_pad != N)

    # ---- fold the 1x1-conv projections once, outside the kernel -------------
    wq = jnp.asarray(wq, f32)                 # (Cq, C)
    wk = jnp.asarray(wk, f32)                 # (Cq, C)
    bq = jnp.asarray(bq, f32)                 # (Cq,)
    wv = jnp.asarray(wv, f32)                 # (C, C)
    bv = jnp.asarray(bv, f32)                 # (C,)

    m_mat = wq.T @ wk                         # (C, C)  M = Wq^T Wk
    w_row = (wk.T @ bq).reshape(1, C)         # (1, C)  w = Wk^T bq
    # bk only appears in row-constant energy terms -> cancelled by the row softmax.
    del bk

    # Augmented weight: one per-batch MXU call produces M@xn, Wv@xn+bv and w.xn.
    #   rows [0, C)      : [ M   | 0  ]
    #   rows [C, 2C)     : [ Wv  | bv ]
    #   row  2C          : [ w   | 0  ]
    a_rows = jnp.concatenate(
        [jnp.concatenate([m_mat, jnp.zeros((C, 1), f32)], axis=1),
         jnp.concatenate([wv, bv.reshape(C, 1)], axis=1),
         jnp.concatenate([w_row, jnp.zeros((1, 1), f32)], axis=1)],
        axis=0)                               # (2C+1, C+1)
    R = 2 * C + 1
    R_pad = _round_up(R, 8)
    a_aug = jnp.pad(a_rows, ((0, R_pad - R), (0, 0))).astype(bf16)   # (R_pad, C+1)

    # NCHW -> (B, C, N): contiguous reshape only; pad keys/queries up to N_pad.
    x_bcn = x_nchw.reshape(B, C, N).astype(f32)
    if mask_pad:
        x_bcn = jnp.pad(x_bcn, ((0, 0), (0, 0), (0, N_pad - N)))
    gamma_s = jnp.asarray(gamma, f32).reshape(1)

    # ---- kernel --------------------------------------------------------------
    def kernel(gamma_ref, x_ref, a_ref, out_ref, xn_ref, mxn_ref, v_ref, wxn_ref):
        # Per-batch precompute: runs once per batch (first query tile only).
        @pl.when(pl.program_id(1) == 0)
        def _():
            xf = x_ref[0]                                              # (C, N_pad)
            ssq = jnp.sum(xf * xf, axis=0, keepdims=True)
            xn = xf * lax.rsqrt(jnp.maximum(ssq, 1e-24))               # F.normalize, eps=1e-12
            xn_ref[...] = xn
            xa = jnp.concatenate([xn, jnp.ones((1, N_pad), jnp.float32)],
                                 axis=0).astype(jnp.bfloat16)          # (C+1, N_pad)
            z = jnp.dot(a_ref[...], xa,
                        preferred_element_type=jnp.float32)            # (R_pad, N_pad)
            mxn_ref[...] = z[0:C].astype(jnp.bfloat16)                 # M @ xn
            v_ref[...] = z[C:2 * C].astype(jnp.bfloat16)               # Wv @ xn + bv
            wxn_ref[...] = z[2 * C:2 * C + 1]                          # w . xn

        # Per query tile.
        t = pl.program_id(1)
        q0 = pl.multiple_of(t * TQ, 128)
        xq = xn_ref[:, pl.ds(q0, TQ)]                                  # (C, TQ) f32

        # energy[i, j] = xq_i^T M xn_j + w.xn_j  (contraction over channels).
        e = lax.dot_general(xq.astype(jnp.bfloat16), mxn_ref[...],
                            (((0,), (0,)), ((), ())),
                            preferred_element_type=jnp.float32)        # (TQ, N_pad)
        e = e + wxn_ref[...]
        if mask_pad:
            col = lax.broadcasted_iota(jnp.int32, (TQ, N_pad), 1)
            e = jnp.where(col < N, e, -1e30)                           # mask padded keys

        # Numerically stable softmax over keys (lanes); exact reciprocal keeps
        # the error budget for the bf16 MXU casts.
        e = e - jnp.max(e, axis=-1, keepdims=True)
        p = jnp.exp(e)
        attn = p * pl.reciprocal(jnp.sum(p, axis=-1, keepdims=True), approx=False)

        # out[c, i] = sum_j v[c, j] * attn[i, j]  (NT matmul over lanes).
        out = lax.dot_general(v_ref[...], attn.astype(jnp.bfloat16),
                              (((1,), (1,)), ((), ())),
                              preferred_element_type=jnp.float32)      # (C, TQ)

        out_ref[0] = gamma_ref[0] * out + xq

    out_bcn = pl.pallas_call(
        kernel,
        out_shape=jax.ShapeDtypeStruct((B, C, N_pad), f32),
        grid=(B, num_t),
        in_specs=[
            pl.BlockSpec(memory_space=pltpu.MemorySpace.SMEM),         # gamma (1,)
            pl.BlockSpec((1, C, N_pad), lambda b, t: (b, 0, 0)),       # x, full row per batch
            pl.BlockSpec((R_pad, C + 1), lambda b, t: (0, 0)),         # folded weights
        ],
        out_specs=pl.BlockSpec((1, C, TQ), lambda b, t: (b, 0, t)),
        scratch_shapes=[
            pltpu.VMEM((C, N_pad), jnp.float32),                       # xn
            pltpu.VMEM((C, N_pad), jnp.bfloat16),                      # M @ xn
            pltpu.VMEM((C, N_pad), jnp.bfloat16),                      # Wv @ xn + bv
            pltpu.VMEM((1, N_pad), jnp.float32),                       # w . xn
        ],
        compiler_params=pltpu.CompilerParams(
            dimension_semantics=("parallel", "arbitrary")),            # scratch carries over t
    )(gamma_s, x_bcn, a_aug)

    if mask_pad:
        out_bcn = out_bcn[:, :, :N]
    return out_bcn.reshape(B, C, W, H)


def self_attention_reference(x_nchw, gamma, wq, bq, wk, bk, wv, bv):
    """Pure-JAX reference mirroring the PyTorch forward (for validation)."""
    B, C, W, H = x_nchw.shape
    N = W * H
    norm = jnp.sqrt(jnp.sum(x_nchw * x_nchw, axis=1, keepdims=True))
    xn = x_nchw / jnp.maximum(norm, 1e-12)
    xf = xn.reshape(B, C, N)
    q = jnp.einsum('oc,bcn->bon', wq, xf) + bq[None, :, None]
    k = jnp.einsum('oc,bcn->bon', wk, xf) + bk[None, :, None]
    v = jnp.einsum('oc,bcn->bon', wv, xf) + bv[None, :, None]
    energy = jnp.einsum('bci,bcj->bij', q, k)
    attn = jax.nn.softmax(energy, axis=-1)
    out = jnp.einsum('bcj,bij->bci', v, attn).reshape(B, C, W, H)
    return gamma[0] * out + xn


if __name__ == "__main__":
    def run_case(B, C, W, H, seed):
        Cq = max(C // 8, 1)
        key = jax.random.PRNGKey(seed)
        kx, kwq, kbq, kwk, kbk, kwv, kbv = jax.random.split(key, 7)

        x = jax.random.normal(kx, (B, C, W, H), dtype=jnp.float32)
        scale = 0.1
        wq = scale * jax.random.normal(kwq, (Cq, C), dtype=jnp.float32)
        bq = scale * jax.random.normal(kbq, (Cq,), dtype=jnp.float32)
        wk = scale * jax.random.normal(kwk, (Cq, C), dtype=jnp.float32)
        bk = scale * jax.random.normal(kbk, (Cq,), dtype=jnp.float32)
        wv = scale * jax.random.normal(kwv, (C, C), dtype=jnp.float32)
        bv = scale * jax.random.normal(kbv, (C,), dtype=jnp.float32)
        # Module inits gamma to 0 (output would collapse to normalize(x)); use
        # a nonzero deterministic gamma so the attention path contributes.
        gamma = jnp.array([0.5], dtype=jnp.float32)

        out = jax.block_until_ready(
            self_attention_pallas(x, gamma, wq, bq, wk, bk, wv, bv))
        ref = self_attention_reference(x, gamma, wq, bq, wk, bk, wv, bv)
        assert out.shape == (B, C, W, H)
        max_err = jnp.max(jnp.abs(out - ref))
        # Tolerance covers the bf16 MXU operands (f32 accumulation everywhere).
        assert jnp.allclose(out, ref, atol=5e-3, rtol=5e-3), f"max abs err {max_err}"

    run_case(2, 32, 16, 16, 0)   # N=256: two query tiles/batch, exercises scratch reuse
    run_case(1, 32, 12, 12, 1)   # N=144: exercises the N-padding + key-mask path
    print("KERNEL_OK")
</pallas_src>

<mosaic_0001>
module attributes {stable_mosaic.version = 11 : i64} {
  func.func @kernel(%arg0: i32, %arg1: i32, %arg2: memref<1xf32, #tpu.memory_space<smem>>, %arg3: memref<1x32x256xf32, #tpu.memory_space<vmem>>, %arg4: memref<72x33xbf16, #tpu.memory_space<vmem>>, %arg5: memref<1x32x128xf32, #tpu.memory_space<vmem>>, %arg6: memref<32x256xf32, #tpu.memory_space<vmem>>, %arg7: memref<32x256xbf16, #tpu.memory_space<vmem>>, %arg8: memref<32x256xbf16, #tpu.memory_space<vmem>>, %arg9: memref<1x256xf32, #tpu.memory_space<vmem>>) attributes {dimension_semantics = [#tpu.dimension_semantics<parallel>, #tpu.dimension_semantics<arbitrary>], iteration_bounds = array<i64: 2, 2>, scalar_prefetch = 0 : i64, scratch_operands = 4 : i64, tpu.core_type = #tpu.core_type<tc>, window_params = [{transform_indices = @transform_0, window_bounds = array<i64: 1>}, {transform_indices = @transform_1, window_bounds = array<i64: 1, 32, 256>}, {pipeline_mode = #tpu.pipeline_mode<synchronous>, transform_indices = @transform_2, window_bounds = array<i64: 72, 33>}, {transform_indices = @transform_3, window_bounds = array<i64: 1, 32, 128>}]} {
    %c0_i32 = arith.constant 0 : i32
    %0 = arith.cmpi eq, %arg1, %c0_i32 : i32
    %1 = arith.extui %0 : i1 to i32
    %c0_i32_0 = arith.constant 0 : i32
    %2 = arith.cmpi ne, %1, %c0_i32_0 : i32
    scf.if %2 {
      %c0_14 = arith.constant 0 : index
      %c0_15 = arith.constant 0 : index
      %c0_16 = arith.constant 0 : index
      %33 = vector.load %arg3[%c0_14, %c0_15, %c0_16] : memref<1x32x256xf32, #tpu.memory_space<vmem>>, vector<1x32x256xf32>
      %34 = vector.shape_cast %33 : vector<1x32x256xf32> to vector<32x256xf32>
      %35 = arith.mulf %34, %34 : vector<32x256xf32>
      %cst_17 = arith.constant dense<0.000000e+00> : vector<256xf32>
      %36 = vector.multi_reduction <add>, %35, %cst_17 [0] : vector<32x256xf32> to vector<256xf32>
      %37 = vector.shape_cast %36 : vector<256xf32> to vector<1x256xf32>
      %cst_18 = arith.constant 1.000000e-24 : f32
      %38 = vector.broadcast %cst_18 : f32 to vector<1x256xf32>
      %39 = arith.maximumf %37, %38 : vector<1x256xf32>
      %40 = math.rsqrt %39 : vector<1x256xf32>
      %41 = vector.broadcast %40 : vector<1x256xf32> to vector<32x256xf32>
      %42 = arith.mulf %34, %41 : vector<32x256xf32>
      %c0_19 = arith.constant 0 : index
      %c0_20 = arith.constant 0 : index
      %43 = vector.load %arg6[%c0_19, %c0_20] : memref<32x256xf32, #tpu.memory_space<vmem>>, vector<32x256xf32>
      tpu.vector_store %arg6[%c0_19, %c0_20], %42 {strides = array<i32>} : memref<32x256xf32, #tpu.memory_space<vmem>>, vector<32x256xf32>,
      %cst_21 = arith.constant 1.000000e+00 : f32
      %44 = vector.broadcast %cst_21 : f32 to vector<1x256xf32>
      %45 = tpu.concatenate %42, %44 in 0 : vector<32x256xf32>, vector<1x256xf32> -> vector<33x256xf32>
      %46 = arith.truncf %45 : vector<33x256xf32> to vector<33x256xbf16>
      %c0_22 = arith.constant 0 : index
      %c0_23 = arith.constant 0 : index
      %47 = vector.load %arg4[%c0_22, %c0_23] : memref<72x33xbf16, #tpu.memory_space<vmem>>, vector<72x33xbf16>
      %cst_24 = arith.constant dense<0.000000e+00> : vector<72x256xf32>
      %48 = tpu.matmul %47, %46, %cst_24 {dimension_numbers = #tpu.dot_dimension_numbers<[1], [0], [0], [1], [0, 0, 1, 1], [], []>} : vector<72x33xbf16>, vector<33x256xbf16>, vector<72x256xf32> -> vector<72x256xf32>
      %49 = vector.extract_strided_slice %48 {offsets = [0, 0], sizes = [32, 256], strides = [1, 1]} : vector<72x256xf32> to vector<32x256xf32>
      %50 = arith.truncf %49 : vector<32x256xf32> to vector<32x256xbf16>
      %c0_25 = arith.constant 0 : index
      %c0_26 = arith.constant 0 : index
      %51 = vector.load %arg7[%c0_25, %c0_26] : memref<32x256xbf16, #tpu.memory_space<vmem>>, vector<32x256xbf16>
      tpu.vector_store %arg7[%c0_25, %c0_26], %50 {strides = array<i32>} : memref<32x256xbf16, #tpu.memory_space<vmem>>, vector<32x256xbf16>,
      %52 = vector.extract_strided_slice %48 {offsets = [32, 0], sizes = [32, 256], strides = [1, 1]} : vector<72x256xf32> to vector<32x256xf32>
      %53 = arith.truncf %52 : vector<32x256xf32> to vector<32x256xbf16>
      %c0_27 = arith.constant 0 : index
      %c0_28 = arith.constant 0 : index
      %54 = vector.load %arg8[%c0_27, %c0_28] : memref<32x256xbf16, #tpu.memory_space<vmem>>, vector<32x256xbf16>
      tpu.vector_store %arg8[%c0_27, %c0_28], %53 {strides = array<i32>} : memref<32x256xbf16, #tpu.memory_space<vmem>>, vector<32x256xbf16>,
      %55 = vector.extract_strided_slice %48 {offsets = [64, 0], sizes = [1, 256], strides = [1, 1]} : vector<72x256xf32> to vector<1x256xf32>
      %c0_29 = arith.constant 0 : index
      %c0_30 = arith.constant 0 : index
      %56 = vector.load %arg9[%c0_29, %c0_30] : memref<1x256xf32, #tpu.memory_space<vmem>>, vector<1x256xf32>
      tpu.vector_store %arg9[%c0_29, %c0_30], %55 {strides = array<i32>} : memref<1x256xf32, #tpu.memory_space<vmem>>, vector<1x256xf32>,
    } else {
    }
    %c128_i32 = arith.constant 128 : i32
    %3 = arith.muli %arg1, %c128_i32 : i32
    %4 = tpu.assume_multiple %3, 128 : i32
    %c0 = arith.constant 0 : index
    %5 = arith.index_cast %4 : i32 to index
    %6 = vector.load %arg6[%c0, %5] : memref<32x256xf32, #tpu.memory_space<vmem>>, vector<32x128xf32>
    %7 = arith.truncf %6 : vector<32x128xf32> to vector<32x128xbf16>
    %c0_1 = arith.constant 0 : index
    %c0_2 = arith.constant 0 : index
    %8 = vector.load %arg7[%c0_1, %c0_2] : memref<32x256xbf16, #tpu.memory_space<vmem>>, vector<32x256xbf16>
    %cst = arith.constant dense<0.000000e+00> : vector<128x256xf32>
    %9 = tpu.matmul %7, %8, %cst {dimension_numbers = #tpu.dot_dimension_numbers<[0], [0], [1], [1], [0, 1, 1, 1], [], []>} : vector<32x128xbf16>, vector<32x256xbf16>, vector<128x256xf32> -> vector<128x256xf32>
    %c0_3 = arith.constant 0 : index
    %c0_4 = arith.constant 0 : index
    %10 = vector.load %arg9[%c0_3, %c0_4] : memref<1x256xf32, #tpu.memory_space<vmem>>, vector<1x256xf32>
    %11 = vector.broadcast %10 : vector<1x256xf32> to vector<128x256xf32>
    %12 = arith.addf %9, %11 : vector<128x256xf32>
    %cst_5 = arith.constant dense<0xFF800000> : vector<128xf32>
    %13 = vector.multi_reduction <maximumf>, %12, %cst_5 [1] : vector<128x256xf32> to vector<128xf32>
    %14 = vector.shape_cast %13 : vector<128xf32> to vector<128x1xf32>
    %15 = vector.broadcast %14 : vector<128x1xf32> to vector<128x256xf32>
    %16 = arith.subf %12, %15 : vector<128x256xf32>
    %17 = math.exp %16 : vector<128x256xf32>
    %cst_6 = arith.constant dense<0.000000e+00> : vector<128xf32>
    %18 = vector.multi_reduction <add>, %17, %cst_6 [1] : vector<128x256xf32> to vector<128xf32>
    %19 = vector.shape_cast %18 : vector<128xf32> to vector<128x1xf32>
    %20 = tpu.reciprocal %19 : vector<128x1xf32> -> vector<128x1xf32>
    %21 = vector.broadcast %20 : vector<128x1xf32> to vector<128x256xf32>
    %22 = arith.mulf %17, %21 : vector<128x256xf32>
    %c0_7 = arith.constant 0 : index
    %c0_8 = arith.constant 0 : index
    %23 = vector.load %arg8[%c0_7, %c0_8] : memref<32x256xbf16, #tpu.memory_space<vmem>>, vector<32x256xbf16>
    %24 = arith.truncf %22 : vector<128x256xf32> to vector<128x256xbf16>
    %cst_9 = arith.constant dense<0.000000e+00> : vector<32x128xf32>
    %25 = tpu.matmul %23, %24, %cst_9 {dimension_numbers = #tpu.dot_dimension_numbers<[1], [1], [0], [0], [0, 0, 1, 0], [], []>} : vector<32x256xbf16>, vector<128x256xbf16>, vector<32x128xf32> -> vector<32x128xf32>
    %c0_10 = arith.constant 0 : index
    %26 = memref.load %arg2[%c0_10] : memref<1xf32, #tpu.memory_space<smem>>
    %27 = vector.broadcast %26 : f32 to vector<32x128xf32>
    %28 = arith.mulf %27, %25 : vector<32x128xf32>
    %29 = arith.addf %28, %6 : vector<32x128xf32>
    %c0_11 = arith.constant 0 : index
    %c0_12 = arith.constant 0 : index
    %c0_13 = arith.constant 0 : index
    %30 = vector.load %arg5[%c0_11, %c0_12, %c0_13] : memref<1x32x128xf32, #tpu.memory_space<vmem>>, vector<1x32x128xf32>
    %31 = vector.shape_cast %30 : vector<1x32x128xf32> to vector<32x128xf32>
    %32 = vector.shape_cast %29 : vector<32x128xf32> to vector<1x32x128xf32>
    tpu.vector_store %arg5[%c0_11, %c0_12, %c0_13], %32 {strides = array<i32>} : memref<1x32x128xf32, #tpu.memory_space<vmem>>, vector<1x32x128xf32>,
    return
  }
  func.func @transform_0(%arg0: i32, %arg1: i32) -> i32 {
    %c0_i32 = arith.constant 0 : i32
    %c0_i32_0 = arith.constant 0 : i32
    return %c0_i32 : i32
  }
  func.func @transform_1(%arg0: i32, %arg1: i32) -> (i32, i32, i32) {
    %c0_i32 = arith.constant 0 : i32
    %c0_i32_0 = arith.constant 0 : i32
    %c0_i32_1 = arith.constant 0 : i32
    return %arg0, %c0_i32, %c0_i32_0 : i32, i32, i32
  }
  func.func @transform_2(%arg0: i32, %arg1: i32) -> (i32, i32) {
    %c0_i32 = arith.constant 0 : i32
    %c0_i32_0 = arith.constant 0 : i32
    %c0_i32_1 = arith.constant 0 : i32
    return %c0_i32, %c0_i32_0 : i32, i32
  }
  func.func @transform_3(%arg0: i32, %arg1: i32) -> (i32, i32, i32) {
    %c0_i32 = arith.constant 0 : i32
    %c0_i32_0 = arith.constant 0 : i32
    return %arg0, %c0_i32, %arg1 : i32, i32, i32
  }
}

</mosaic_0001>

<bundles_post_ra>
// kernel: tpu_custom_call.1
= control target key start
LH: loop header
LB: loop body
LE: loop exit
PB: predicated region body
PF: predicated region fallthrough
CT: control target
= control target key end

     0   :  { %s2618_s0 = inlined_call_operand.<no memory space> [shape: f32[1], index: 0, kind: input, shape index: {}]   ;;  %s2619_s1 = inlined_call_operand.hbm [shape: f32[2,32,256], index: 1, kind: input, shape index: {}]   ;;  %s2620_s2 = inlined_call_operand.vmem [shape: bf16[72,33], index: 2, kind: input, shape index: {}]   ;;  %s2621_s3 = inlined_call_operand.hbm [shape: f32[2,32,256], index: 3, kind: output, shape index: {}]  }
   0x1   :  { %8 = sst [smem:[#allocation6]] %s2618_s0 }
   0x2   :  { %9 = vsyncpa [#allocation8], 0 }
   0x3   :  { %11 = vsyncpa [#allocation8 + $0x1], 0 }
   0x4   :  { %12 = vsyncpa [#allocation9], 0 }
   0x5   :  { %14 = vsyncpa [#allocation9 + $0x1], 0  ;;  %s1766_s14 = smov 0   ;;  %s1768_s15 = smov 0  }
   0x6   :  { %s1770_s16 = smov 0   ;;  %s1772_s17 = smov 0  }
   0x7   :  { %s1774_s18 = smov 0   ;;  %s1776_s19 = smov 0  }
   0x8   :  { %s1778_s20 = smov 0   ;;  %s1780_s21 = smov 0  }
   0x9   :  { %s1782_s0 = smov 0   ;;  %s1784_s22 = smov 0  }
   0xa   :  { %s1786_s23 = smov 0  }
   0xb LB: > { %2625 = sst [smem:[#allocation13_spill]] %s1731_s22  ;;  %s1259_s24 = sadd.s32 4294967295, %s1735_s23   ;;  %s1735_s23 = sphi %s1786_s23, %s20_s23   ;;  %s1731_s22 = sphi %s1784_s22, %s2666_s22   ;;  %s1727_s0 = sphi %s1782_s0, %s2674_s0   ;;  %s1723_s21 = sphi %s1780_s21, %s2664_s21   ;;  %s1719_s20 = sphi %s1778_s20, %s2673_s20   ;;  %s1715_s19 = sphi %s1776_s19, %s2672_s19   ;;  %s1711_s18 = sphi %s1774_s18, %s2671_s18   ;;  %s1707_s17 = sphi %s1772_s17, %s2670_s17   ;;  %s1703_s16 = sphi %s1770_s16, %s2669_s16   ;;  %s1699_s15 = sphi %s1768_s15, %s2668_s15   ;;  %s1695_s14 = sphi %s1766_s14, %s2667_s14  }
   0xc   : > { %s1260_s25 = sadd.s32 4294967294, %s1735_s23   ;;  %s29_s26 = sadd.s32 1, %s1727_s0 }
   0xd   : > { %s32_s27 = sadd.s32 1, %s1731_s22  ;;  %p30_p0 = scmp.ge.s32.totalorder %s29_s26, 2 }
   0xe   : > { %s60_s28 = sadd.s32 1, %s1715_s19  ;;  %p67_p1 = scmp.ne.s32.totalorder %s1715_s19, %s1711_s18 }
   0xf   : > { %p68_p2 = scmp.eq.s32.totalorder %s1735_s23, 0  ;;  %s2676_s26 = smov (%p30_p0, %s29_s26), 0 }
  0x10   : > { %2626 = sst [smem:[#allocation14_spill]] %s2676_s26  ;;  %s2678_s27 = smov (!%p30_p0, %s32_s27), %s1731_s22 }
  0x11   : > { %p1830_p3 = por %p68_p2, %p67_p1  ;;  %p73_p4 = scmp.ne.s32.totalorder %s1711_s18, %s1707_s17 }
  0x12   : > { %p34_p5 = scmp.ge.s32.totalorder %s2678_s27, 2  ;;  %p74_p6 = scmp.eq.s32.totalorder %s1259_s24, 0 }
  0x13   : > { %s105_s30 = ssub.s32 %s1727_s0, %s2676_s26  ;;  %s109_s4 = sadd.s32 1, %s1703_s16 }
  0x14   : > { %s2680_s27 = smov (%p34_p5, %s2678_s27), 0  ;;  %p1840_p7 = por %p74_p6, %p73_p4 }
  0x15   : > { %2628 = sst [smem:[#allocation15_spill]] %s2680_s27  ;;  %p119_p8 = scmp.ne.s32.totalorder %s1703_s16, %s1699_s15 }
  0x16   : > { %s57_s6 = ssub.s32 %s1731_s22, %s2680_s27  ;;  %p120_p9 = scmp.eq.s32.totalorder %s1259_s24, 3 }
  0x17   : > { %p58_p10 = scmp.eq.s32.totalorder %s57_s6, 0  ;;  %s106_s7 = sor.u32 %s105_s30, %s57_s6 }
  0x18   : > { %p107_p11 = scmp.eq.s32.totalorder %s106_s7, 0  ;;  %p1848_p12 = por %p120_p9, %p119_p8 }
  0x19   : > { %s1853_s9 = scalar_select %p58_p10, %s1715_s19, %s60_s28  }
  0x1a   : > { %s1856_s10 = scalar_select %p107_p11, %s1703_s16, %s109_s4  }
  0x1b   : > { %p125_p13 = scmp.ne.s32.totalorder %s1699_s15, %s1695_s14  ;;  %p126_p0 = scmp.eq.s32.totalorder %s1260_s25, 3 }
  0x1c   : > { %p1382_p1 = scmp.lt.s32.totalorder %s1735_s23, 4  ;;  %s152_s12 = sand.u32 1, %s1715_s19  }
  0x1d   : > { %p1861_p2 = por %p126_p0, %p125_p13  ;;  %s1263_s13 = sshll.u32 %s152_s12, 6 }
  0x1e   : > { %s1351_s17 = sshll.u32 %s1731_s22, 6  ;;  %s156_s28 = scalar_lea.vmem [#allocation7], %s1263_s13 }
  0x1f   : > { %s161_s6 = scalar_lea.hbm %s2619_s1, %s1351_s17  ;;  %s164_s7 = sshll.u32 %s156_s28, 4  ;;  %s165_s7 = int_to_ptr.vmem [resolvable:$true] %s164_s7 }
  0x20   : > { %s162_s27 = sshll.u32 %s161_s6, 4  ;;  %p1375_p4 = pnand %p1382_p1, %p1830_p3  ;;  %s163_s27 = int_to_ptr.hbm [resolvable:$true] %s162_s27 }
  0x21   : > { %p1266_p5 = scmp.ge.s32.totalorder %s1735_s23, 1  ;;  %s153_s25 = scalar_lea.sflag [#allocation8], %s152_s12 }
  0x22   : > { %s1737_s4 = smov 256   ;;  %s1738_s26 = smov 16  }
  0x23   : > { %1377 = dma.hbm_to_vmem [thread:$0]  (!%p1375_p4), %s163_s27, 1024, %s165_s7, %s153_s25, %s1737_s4, %s1737_s4, %s1738_s26  }
  0x24   : > { %p172_p6 = scmp.lt.s32.totalorder %s1735_s23, 5 }
  0x26   : > { %p173_p8 = pnand %p1266_p5, %p172_p6 }
  0x27   : > { %s178_s22 = sand.u32 (!%p173_p8), 1, %s1711_s18  }
  0x28   : > { %176 = sbr.rel (%p173_p8) target bundleno = 1203 (0x4b3), region = 32  ;;  %s1267_s24 = sshll.u32 (!%p173_p8), %s178_s22, 6 }
  0x29   : > { %s179_s17 = scalar_lea.sflag (!%p173_p8), [#allocation8], %s178_s22  ;;  %s182_s13 = scalar_lea.vmem (!%p173_p8), [#allocation7], %s1267_s24 }
  0x2d   : > { %1686 = dma.done.wait (%p1840_p7), %s179_s17, 1024  }
  0x2e   : > { %1688 = vsyncadd (%p1840_p7), %s179_s17, 4294966272  ;;  %s203_s29 = sand.u32 1, %s1699_s15   ;;  %p1269_p3 = scmp.ne.s32.totalorder %s1719_s20, 0 }
  0x2f   : > { %s1268_s12 = sshll.u32 %s203_s29, 5 }
  0x30   : > { %s1882_s26 = scalar_lea.vmem [#allocation10], %s1268_s12  ;;  %210 = sbr.rel (%p1269_p3) target bundleno = 275 (0x113), region = 40 }
  0x35   : > { %vm336_vm0 = vcmask 1040384   ;;  %v1885_v0 = vld [vmem:[%s182_s13] sm:$0xff]  ;;  %v1887_v1 = vld [vmem:[%s182_s13 + $0x10] sm:$0xff]  ;;  %v1739_v3 = vmov 0   ;;  %v212_v9 = vld [vmem:[%s182_s13 + $0x8] sm:$0xff]  ;;  %vm320_vm7 = vcmask 269312  }
  0x36   : > { %v1889_v2 = vld [vmem:[%s182_s13 + $0x20] sm:$0xff]  ;;  %v338_v4 = vsel %vm336_vm0, 65535, %v1739_v3  ;;  %v217_v5 = vld [vmem:[%s182_s13 + $0x30] sm:$0xff]  ;;  %v219_v6 = vmul.f32 %v1885_v0, %v1885_v0  ;;  %v221_v7 = vmul.f32 %v1887_v1, %v1887_v1  ;;  %v1898_v10 = vld [vmem:[%s182_s13 + $0x18] sm:$0xff]  ;;  %v220_v14 = vmul.f32 %v212_v9, %v212_v9 }
  0x37   : > { %v223_v8 = vmul.f32 %v1889_v2, %v1889_v2  ;;  %v340_v11 = vand.u32 1.0|1.0, %v338_v4  ;;  %v216_v12 = vld [vmem:[%s182_s13 + $0x28] sm:$0xff]  ;;  %v218_v13 = vld [vmem:[%s182_s13 + $0x38] sm:$0xff]  ;;  %v222_v15 = vmul.f32 %v1898_v10, %v1898_v10  ;;  %v225_v16 = vmul.f32 %v217_v5, %v217_v5 }
  0x38   : > { %v227_v17 = vadd.f32 %v221_v7, %v219_v6  ;;  %v224_v18 = vmul.f32 %v216_v12, %v216_v12  ;;  %v226_v19 = vmul.f32 %v218_v13, %v218_v13  ;;  %v296_v3 = vld [vmem:[%s2620_s2 + $0x20] sm:$0xf]  ;;  %v1354_v7 = vld [vmem:[%s2620_s2 + $0x10] sm:$0xff] }
  0x39   : > { %347 = vmatpush.bf16.msra.mxu0 %v340_v11  ;;  %380 = vmatpush.bf16.msra.mxu1 %v340_v11  ;;  %v236_v20 = vadd.f32 %v222_v15, %v220_v14  ;;  %v314_v4 = vunpack.c.l.b16 %v296_v3 }
  0x3a   : > { %v228_v21 = vadd.f32 %v227_v17, %v223_v8  ;;  %1364 = vmatpush.bf16.msra.mxu2 %v340_v11  ;;  %1367 = vmatpush.bf16.msra.mxu3 %v340_v11 }
  0x3b   : > { %v237_v22 = vadd.f32 %v236_v20, %v224_v18  ;;  %v319_v6 = vpack.c.b16 %v314_v4, %v314_v4 }
  0x3c   : > { %v229_v23 = vadd.f32 %v228_v21, %v225_v16 }
  0x3d   : > { %v238_v24 = vadd.f32 %v237_v22, %v226_v19 }
  0x3e   : > { %v230_v25 = vrot.slane %v229_v23, 4 }
  0x3f   : > { %v239_v26 = vrot.slane %v238_v24, 4 }
  0x40   : > { %v231_v27 = vadd.f32 %v230_v25, %v229_v23  ;;  %v429_v23 = vlaneseq }
  0x41   : > { %v240_v28 = vadd.f32 %v239_v26, %v238_v24 }
  0x42   : > { %v232_v29 = vrot.slane %v231_v27, 2  ;;  %vm431_vm8 = vcmp.lt.s32.totalorder %v429_v23, 256 }
  0x43   : > { %v241_v30 = vrot.slane %v240_v28, 2 }
  0x44   : > { %v233_v31 = vadd.f32 %v232_v29, %v231_v27 }
  0x45   : > { %v242_v32 = vadd.f32 %v241_v30, %v240_v28 }
  0x46   : > { %v234_v33 = vrot.slane %v233_v31, 1 }
  0x47   : > { %v243_v34 = vrot.slane %v242_v32, 1 }
  0x48   : > { %v235_v35 = vadd.f32 %v234_v33, %v233_v31 }
  0x49   : > { %v244_v36 = vadd.f32 %v243_v34, %v242_v32 }
  0x4a   : > { %v245_v37 = vmax.f32 %v235_v35, 1e-24 }
  0x4b   : > { %v246_v38 = vmax.f32 %v244_v36, 1e-24 }
  0x4c   : > { %1479 = vrsqrt.f32 %v245_v37  ;;  %vm253_vm1 = vweird.f32 %v245_v37 }
  0x4d   : > { %1481 = vrsqrt.f32 %v246_v38  ;;  %vm263_vm3 = vweird.f32 %v246_v38 }
  0x52   : > { %v1480_v39 = vpop.eup %1479 }
  0x53   : > { %v1482_v40 = vpop.eup %1481  ;;  %v248_v41 = vmul.f32 %v1480_v39, %v245_v37  ;;  %vm254_vm2 = vweird.f32 %v1480_v39 }
  0x54   : > { %v258_v42 = vmul.f32 %v1482_v40, %v246_v38  ;;  %vm264_vm4 = vweird.f32 %v1482_v40  ;;  %vm255_vm5 = vmor %vm253_vm1, %vm254_vm2 }
  0x55   : > { %v249_v43 = vmul.f32 %v1480_v39, %v248_v41  ;;  %vm265_vm6 = vmor %vm263_vm3, %vm264_vm4 }
  0x56   : > { %v259_v44 = vmul.f32 %v1482_v40, %v258_v42 }
  0x57   : > { %v250_v45 = vmul.f32 0.5, %v249_v43 }
  0x58   : > { %v260_v46 = vmul.f32 0.5, %v259_v44 }
  0x59   : > { %v251_v47 = vsub.f32 1.5, %v250_v45 }
  0x5a   : > { %v261_v48 = vsub.f32 1.5, %v260_v46 }
  0x5b   : > { %v252_v49 = vmul.f32 %v1480_v39, %v251_v47 }
  0x5c   : > { %v262_v50 = vmul.f32 %v1482_v40, %v261_v48 }
  0x5d   : > { %v256_v51 = vsel %vm255_vm5, %v1480_v39, %v252_v49 }
  0x5e   : > { %v271_v52 = vmul.f32 %v256_v51, %v1889_v2  ;;  %v273_v53 = vmul.f32 %v256_v51, %v217_v5  ;;  %v266_v54 = vsel %vm265_vm6, %v1482_v40, %v262_v50  ;;  %v267_v55 = vmul.f32 %v256_v51, %v1885_v0  ;;  %v1352_v0 = vld [vmem:[%s2620_s2] sm:$0xff]  ;;  %v1353_v5 = vld [vmem:[%s2620_s2 + $0x8] sm:$0xff] }
  0x5f   : > { %v272_v56 = vmul.f32 %v266_v54, %v216_v12  ;;  %v274_v57 = vmul.f32 %v266_v54, %v218_v13  ;;  %v269_v58 = vmul.f32 %v256_v51, %v1887_v1  ;;  %v268_v59 = vmul.f32 %v266_v54, %v212_v9  ;;  %v1355_v1 = vld [vmem:[%s2620_s2 + $0x18] sm:$0xff] }
  0x60   : > { %279 = vst [vmem:[#allocation2 + $0x20] sm:$0xff] %v271_v52  ;;  %v285_v60 = vpack.c.bf16 %v273_v53, %v271_v52  ;;  %v270_v61 = vmul.f32 %v266_v54, %v1898_v10 }
  0x61   : > { %281 = vst [vmem:[#allocation2 + $0x30] sm:$0xff] %v273_v53  ;;  %v286_v62 = vpack.c.bf16 %v274_v57, %v272_v56  ;;  %v283_v63 = vpack.c.bf16 %v269_v58, %v267_v55 }
  0x62   : > { %348 = vmatpush.bf16.msra.mxu0 %v285_v60  ;;  %280 = vst [vmem:[#allocation2 + $0x28] sm:$0xff] %v272_v56  ;;  %1365 = vmatpush.bf16.msra.mxu2 %v285_v60  ;;  %v284_v2 = vpack.c.bf16 %v270_v61, %v268_v59 }
  0x63   : > { %282 = vst [vmem:[#allocation2 + $0x38] sm:$0xff] %v274_v57  ;;  %381 = vmatpush.bf16.msra.mxu1 %v286_v62  ;;  %1368 = vmatpush.bf16.msra.mxu3 %v286_v62 }
  0x64   : > { %275 = vst [vmem:[#allocation2] sm:$0xff] %v267_v55 }
  0x65   : > { %277 = vst [vmem:[#allocation2 + $0x10] sm:$0xff] %v269_v58 }
  0x66   : > { %349 = vmatpush.bf16.msra.mxu0 %v283_v63  ;;  %276 = vst [vmem:[#allocation2 + $0x8] sm:$0xff] %v268_v59  ;;  %1366 = vmatpush.bf16.msra.mxu2 %v283_v63 }
  0x67   : > { %278 = vst [vmem:[#allocation2 + $0x18] sm:$0xff] %v270_v61  ;;  %382 = vmatpush.bf16.msra.mxu1 %v284_v2  ;;  %1369 = vmatpush.bf16.msra.mxu3 %v284_v2 }
  0x69   : > { %1286 = vmatmul.msk.bf16.vlgmr.msra.gmra.mxu0 %vm320_vm7, %v1352_v0  ;;  %1289 = vmatmul.msk.bf16.vlgmr.msra.gmra.mxu2 %vm320_vm7, %v1355_v1 }
  0x6a   : > { %1291 = vmatmul.msk.bf16.vlgmr.msra.gmra.mxu1 %vm320_vm7, %v1352_v0  ;;  %1294 = vmatmul.msk.bf16.vlgmr.msra.gmra.mxu3 %vm320_vm7, %v1355_v1 }
  0x79   : > { %1287 = vmatmul.msk.bf16.gmra.mxu0 %vm320_vm7, %v1353_v5  ;;  %1290 = vmatmul.msk.bf16.gmra.mxu2 %vm320_vm7, %v319_v6 }
  0x7a   : > { %1292 = vmatmul.msk.bf16.gmra.mxu1 %vm320_vm7, %v1353_v5  ;;  %1295 = vmatmul.msk.bf16.gmra.mxu3 %vm320_vm7, %v319_v6 }
  0x89   : > { %1288 = vmatmul.msk.bf16.gmra.mxu0 %vm320_vm7, %v1354_v7 }
  0x8a   : > { %1293 = vmatmul.msk.bf16.gmra.mxu1 %vm320_vm7, %v1354_v7 }
  0xe6   : > { %v351_v8 = vpop.f32.mrf.mxu0 }
  0xe7   : > { %v384_v9 = vpop.f32.mrf.mxu1 }
  0xe8   : > { %v408_v10 = vpack.c.bf16 %v384_v9, %v351_v8 }
  0xea   : > { %412 = vst [vmem:[#allocation3] sm:$0xff] %v408_v10 }
  0xec   : > { %v366_v11 = vpop.f32.mrf.mxu2 }
  0xed   : > { %v399_v12 = vpop.f32.mrf.mxu3 }
  0xee   : > { %v353_v13 = vpop.f32.mrf.mxu0  ;;  %v418_v14 = vpack.c.bf16 %v399_v12, %v366_v11 }
  0xef   : > { %v386_v15 = vpop.f32.mrf.mxu1 }
  0xf0   : > { %v409_v16 = vpack.c.bf16 %v386_v15, %v353_v13  ;;  %422 = vst [vmem:[#allocation4 + $0x10] sm:$0xff] %v418_v14 }
  0xf2   : > { %413 = vst [vmem:[#allocation3 + $0x8] sm:$0xff] %v409_v16 }
  0xf4   : > { %v368_v17 = vpop.f32.mrf.mxu2 }
  0xf5   : > { %v401_v18 = vpop.f32.mrf.mxu3 }
  0xf6   : > { %v356_v19 = vpop.f32.mrf.mxu0  ;;  %v419_v20 = vpack.c.bf16 %v401_v18, %v368_v17 }
  0xf7   : > { %v389_v21 = vpop.f32.mrf.mxu1 }
  0xf8   : > { %v410_v22 = vpack.c.bf16 %v389_v21, %v356_v19  ;;  %423 = vst [vmem:[#allocation4 + $0x18] sm:$0xff] %v419_v20 }
  0xfa   : > { %414 = vst [vmem:[#allocation3 + $0x10] sm:$0xff] %v410_v22 }
  0xfc   : > { %v371_v24 = vpop.f32.mrf.mxu2 }
  0xfd   : > { %v404_v25 = vpop.f32.mrf.mxu3 }
  0xfe   : > { %v358_v26 = vpop.f32.mrf.mxu0  ;;  %v426_v27 = vrot.slane %v404_v25, 7 }
  0xff   : > { %v391_v28 = vpop.f32.mrf.mxu1 }
 0x100   : > { %v411_v29 = vpack.c.bf16 %v391_v28, %v358_v26  ;;  %v427_v30 = vsel %vm336_vm0, %v371_v24, %v426_v27 }
 0x101   : > { %433 = vst.msk [vmem:[#allocation5] sm:$0x3] %vm431_vm8, %v427_v30 }
 0x102   : > { %415 = vst [vmem:[#allocation3 + $0x18] sm:$0xff] %v411_v29 }
 0x104   : > { %v373_v31 = vpop.f32.mrf.mxu2 }
 0x105   : > { %v406_v32 = vpop.f32.mrf.mxu3 }
 0x106   : > { %v361_v33 = vpop.f32.mrf.mxu0 }
 0x107   : > { %v394_v34 = vpop.f32.mrf.mxu1 }
 0x108   : > { %v416_v35 = vpack.c.bf16 %v394_v34, %v361_v33 }
 0x10a   : > { %420 = vst [vmem:[#allocation4] sm:$0xff] %v416_v35 }
 0x10e   : > { %v363_v36 = vpop.f32.mrf.mxu0 }
 0x10f   : > { %v396_v37 = vpop.f32.mrf.mxu1 }
 0x110   : > { %v417_v38 = vpack.c.bf16 %v396_v37, %v363_v36 }
 0x112   : > { %421 = vst [vmem:[#allocation4 + $0x8] sm:$0xff] %v417_v38 }
 0x113 PF: > { %s1296_s17 = sshll.u32 %s1719_s20, 7  ;;  %v1308_v39 = vld [vmem:[#allocation3 + $0x10] sm:$0xf]  ;;  %v1359_v40 = vld [vmem:[#allocation3 + $0x14] sm:$0xf0]  ;;  %vm491_vm9 = vcmask 261120  }
 0x114   : > { %s435_s13 = sshra.s32 %s1296_s17, 7  ;;  %v1309_v41 = vor.u32 %v1359_v40, %v1308_v39  ;;  %v1358_v42 = vld [vmem:[#allocation3 + $0x14] sm:$0xf]  ;;  %v1310_v43 = vld [vmem:[#allocation3 + $0x18] sm:$0xf0]  ;;  %s1140_s27 = sld [smem:[#allocation6]] }
 0x115   : > { %s1297_s12 = sshll.u32 %s435_s13, 3  ;;  %v1313_v44 = vor.u32 %v1358_v42, %v1310_v43  ;;  %v1300_v45 = vld [vmem:[#allocation3] sm:$0xf]  ;;  %v1357_v46 = vld [vmem:[#allocation3 + $0x4] sm:$0xf0]  ;;  %s1347_s5 = sshll.u32 %s1723_s21, 3 }
 0x116   : > { %522 = vmatpush.bf16.msra.mxu0 %v1309_v41  ;;  %v1301_v47 = vor.u32 %v1357_v46, %v1300_v45  ;;  %v1356_v48 = vld [vmem:[#allocation3 + $0x4] sm:$0xf]  ;;  %v1302_v49 = vld [vmem:[#allocation3 + $0x8] sm:$0xf0]  ;;  %s1933_s22 = scalar_lea.vmem [#allocation2], %s1297_s12  ;;  %s1165_s30 = sadd.s32 %s1719_s20, %s1347_s5 }
 0x117   : > { %v439_v50 = vld [vmem:[%s1933_s22] sm:$0xff]  ;;  %v440_v51 = vld [vmem:[%s1933_s22 + $0x10] sm:$0xff]  ;;  %571 = vmatpush.bf16.msra.mxu1 %v1313_v44  ;;  %v1305_v52 = vor.u32 %v1356_v48, %v1302_v49  ;;  %s1348_s6 = sshll.u32 %s1165_s30, 3  ;;  %s1168_s21 = sshll.u32 %s1882_s26, 4  ;;  %s1169_s21 = int_to_ptr.vmem [resolvable:$true] %s1168_s21 }
 0x118   : > { %v443_v53 = vpack.c.bf16 %v440_v51, %v439_v50  ;;  %v441_v54 = vld [vmem:[%s1933_s22 + $0x20] sm:$0xff]  ;;  %v442_v55 = vld [vmem:[%s1933_s22 + $0x30] sm:$0xff]  ;;  %s1167_s25 = scalar_lea.hbm %s2621_s3, %s1348_s6  ;;  %s1155_s20 = scalar_lea.sflag [#allocation9], %s203_s29 }
 0x119   : > { %v444_v56 = vpack.c.bf16 %v442_v55, %v441_v54  ;;  %v449_v17 = vld [vmem:[#allocation5] sm:$0x3]  ;;  %s1170_s4 = sshll.u32 %s1167_s25, 4  ;;  %s1171_s4 = int_to_ptr.hbm [resolvable:$true] %s1170_s4 }
 0x11a   : > { %455 = vxpose.xlu0.c.b16.start [1/2] (short) %v443_v53, 128  ;;  %523 = vmatpush.bf16.msra.mxu0 %v1301_v47  ;;  %v1979_v18 = vperm.slane %v449_v17, 0  ;;  %v1981_v19 = vperm.slane %v449_v17, 1  ;;  %s1627_s24 = sshra.s32 %s1171_s4, 4  ;;  %s1628_s24 = int_to_ptr.hbm [resolvable:$true] %s1627_s24 }
 0x11b   : > { %572 = vmatpush.bf16.msra.mxu1 %v1305_v52  ;;  %s1629_s17 = scalar_lea.hbm %s1628_s24, 32  ;;  %p1634_p11 = scmp.lt.s32.totalorder %s1628_s24, %s2621_s3 }
 0x11c   : > { %p1630_p7 = scmp.ne.s32.totalorder %s1628_s24, %s1629_s17 }
 0x11e   : > { %p1631_p9 = pnand %p1630_p7, %p1848_p12 }
 0x120   : > { %p1632_p10 = pneg %p1631_p9 }
 0x12a   : > { %456 = vxpose.xlu0.c.b16.end [2/2] (short) %v444_v56, 128 }
 0x1c6   : > { %v463_v57 = vpop.trf.xlu0 }
 0x1c7   : > { %1314 = vmatmul.msk.bf16.vlgmr.msra.gmra.mxu0 %vm491_vm9, %v463_v57  ;;  %1322 = vmatmul.msk.bf16.vlgmr.msra.gmra.mxu1 %vm491_vm9, %v463_v57 }
 0x1d6   : > { %v464_v58 = vpop.trf.xlu0 }
 0x1d7   : > { %1315 = vmatmul.msk.bf16.gmra.mxu0 %vm491_vm9, %v464_v58  ;;  %1323 = vmatmul.msk.bf16.gmra.mxu1 %vm491_vm9, %v464_v58 }
 0x1e6   : > { %v465_v59 = vpop.trf.xlu0 }
 0x1e7   : > { %1316 = vmatmul.msk.bf16.gmra.mxu0 %vm491_vm9, %v465_v59  ;;  %1324 = vmatmul.msk.bf16.gmra.mxu1 %vm491_vm9, %v465_v59 }
 0x1f6   : > { %v466_v60 = vpop.trf.xlu0 }
 0x1f7   : > { %1317 = vmatmul.msk.bf16.gmra.mxu0 %vm491_vm9, %v466_v60  ;;  %1325 = vmatmul.msk.bf16.gmra.mxu1 %vm491_vm9, %v466_v60 }
 0x206   : > { %v467_v61 = vpop.trf.xlu0 }
 0x207   : > { %1318 = vmatmul.msk.bf16.gmra.mxu0 %vm491_vm9, %v467_v61  ;;  %1326 = vmatmul.msk.bf16.gmra.mxu1 %vm491_vm9, %v467_v61 }
 0x216   : > { %v468_v62 = vpop.trf.xlu0 }
 0x217   : > { %1319 = vmatmul.msk.bf16.gmra.mxu0 %vm491_vm9, %v468_v62  ;;  %1327 = vmatmul.msk.bf16.gmra.mxu1 %vm491_vm9, %v468_v62 }
 0x226   : > { %v469_v63 = vpop.trf.xlu0 }
 0x227   : > { %1320 = vmatmul.msk.bf16.gmra.mxu0 %vm491_vm9, %v469_v63  ;;  %1328 = vmatmul.msk.bf16.gmra.mxu1 %vm491_vm9, %v469_v63 }
 0x236   : > { %v470_v2 = vpop.trf.xlu0 }
 0x237   : > { %1321 = vmatmul.msk.bf16.gmra.mxu0 %vm491_vm9, %v470_v2  ;;  %1329 = vmatmul.msk.bf16.gmra.mxu1 %vm491_vm9, %v470_v2 }
 0x244   : > { %v1955_v0 = vpop.f32.mrf.mxu0  ;;  %v1957_v1 = vpop.f32.mrf.mxu1 }
 0x24c   : > { %v1959_v3 = vpop.f32.mrf.mxu0  ;;  %v1961_v4 = vpop.f32.mrf.mxu1 }
 0x254   : > { %v1963_v5 = vpop.f32.mrf.mxu0  ;;  %v1965_v6 = vpop.f32.mrf.mxu1 }
 0x255   : > { %v2045_v63 = vadd.f32 %v1963_v5, %v1979_v18  ;;  %v2049_v2 = vadd.f32 %v1965_v6, %v1981_v19  ;;  %v2063_v5 = vadd.f32 %v1955_v0, %v1979_v18  ;;  %v2067_v6 = vadd.f32 %v1957_v1, %v1981_v19 }
 0x25c   : > { %v1967_v7 = vpop.f32.mrf.mxu0  ;;  %v1969_v8 = vpop.f32.mrf.mxu1 }
 0x264   : > { %v535_v9 = vpop.f32.mrf.mxu0  ;;  %v584_v10 = vpop.f32.mrf.mxu1 }
 0x265   : > { %v2028_v57 = vadd.f32 %v535_v9, %v1979_v18  ;;  %v2031_v58 = vadd.f32 %v584_v10, %v1981_v19 }
 0x267   : > { %v626_v61 = vmax.f32 %v2028_v57, %v2031_v58 }
 0x26c   : > { %v1971_v11 = vpop.f32.mrf.mxu0  ;;  %v1973_v12 = vpop.f32.mrf.mxu1 }
 0x26d   : > { %v2083_v0 = vadd.f32 %v1971_v11, %v1979_v18  ;;  %v2087_v1 = vadd.f32 %v1973_v12, %v1981_v19  ;;  %v2103_v12 = vadd.f32 %v1959_v3, %v1979_v18 }
 0x274   : > { %v540_v13 = vpop.f32.mrf.mxu0  ;;  %v589_v14 = vpop.f32.mrf.mxu1 }
 0x275   : > { %v2018_v49 = vadd.f32 %v540_v13, %v1979_v18  ;;  %v2021_v50 = vadd.f32 %v589_v14, %v1981_v19  ;;  %v620_v13 = vmax.f32 %v2045_v63, %v2049_v2 }
 0x277   : > { %v632_v55 = vmax.f32 %v2018_v49, %v2021_v50 }
 0x27c   : > { %v1975_v15 = vpop.f32.mrf.mxu0  ;;  %v1977_v16 = vpop.f32.mrf.mxu1 }
 0x27d   : > { %v2071_v17 = vadd.f32 %v1975_v15, %v1979_v18  ;;  %v629_v15 = vmax.f32 %v2083_v0, %v2087_v1 }
 0x284   : > { %v545_v20 = vpop.f32.mrf.mxu0  ;;  %v594_v21 = vpop.f32.mrf.mxu1 }
 0x285   : > { %v1984_v22 = vadd.f32 %v545_v20, %v1979_v18  ;;  %v1987_v23 = vadd.f32 %v594_v21, %v1981_v19  ;;  %v2075_v20 = vadd.f32 %v1977_v16, %v1981_v19  ;;  %v614_v21 = vmax.f32 %v2063_v5, %v2067_v6 }
 0x286   : > { %v2093_v16 = vadd.f32 %v1967_v7, %v1979_v18 }
 0x287   : > { %v638_v24 = vmax.f32 %v1984_v22, %v1987_v23 }
 0x289   : > { %639 = vmax.xlane.f32.xlu0 %v638_v24  ;;  %v635_v24 = vmax.f32 %v2071_v17, %v2075_v20 }
 0x28c   : > { %v547_v25 = vpop.f32.mrf.mxu0  ;;  %v596_v26 = vpop.f32.mrf.mxu1 }
 0x28d   : > { %v2052_v9 = vadd.f32 %v547_v25, %v1979_v18  ;;  %v2055_v10 = vadd.f32 %v596_v26, %v1981_v19  ;;  %v2097_v25 = vadd.f32 %v1969_v8, %v1981_v19  ;;  %v2107_v26 = vadd.f32 %v1961_v4, %v1981_v19 }
 0x28f   : > { %v641_v14 = vmax.f32 %v2052_v9, %v2055_v10  ;;  %v623_v11 = vmax.f32 %v2093_v16, %v2097_v25  ;;  %v617_v7 = vmax.f32 %v2103_v12, %v2107_v26 }
 0x294   : > { %v550_v27 = vpop.f32.mrf.mxu0  ;;  %v599_v28 = vpop.f32.mrf.mxu1 }
 0x295   : > { %v2034_v59 = vadd.f32 %v550_v27, %v1979_v18  ;;  %v2037_v60 = vadd.f32 %v599_v28, %v1981_v19 }
 0x297   : > { %v644_v62 = vmax.f32 %v2034_v59, %v2037_v60 }
 0x29c   : > { %v552_v29 = vpop.f32.mrf.mxu0  ;;  %v601_v30 = vpop.f32.mrf.mxu1 }
 0x29d   : > { %v2008_v41 = vadd.f32 %v552_v29, %v1979_v18  ;;  %v2011_v42 = vadd.f32 %v601_v30, %v1981_v19 }
 0x29f   : > { %v647_v47 = vmax.f32 %v2008_v41, %v2011_v42 }
 0x2a4   : > { %v555_v31 = vpop.f32.mrf.mxu0  ;;  %v604_v32 = vpop.f32.mrf.mxu1 }
 0x2a5   : > { %v1992_v33 = vadd.f32 %v555_v31, %v1979_v18  ;;  %v1995_v34 = vadd.f32 %v604_v32, %v1981_v19 }
 0x2a7   : > { %v650_v35 = vmax.f32 %v1992_v33, %v1995_v34 }
 0x2a9   : > { %651 = vmax.xlane.f32.xlu2 %v650_v35 }
 0x2ac   : > { %v557_v36 = vpop.f32.mrf.mxu0  ;;  %v606_v37 = vpop.f32.mrf.mxu1 }
 0x2ad   : > { %v2000_v38 = vadd.f32 %v557_v36, %v1979_v18  ;;  %v2003_v39 = vadd.f32 %v606_v37, %v1981_v19 }
 0x2af   : > { %v653_v40 = vmax.f32 %v2000_v38, %v2003_v39 }
 0x2b1   : > { %654 = vmax.xlane.f32.xlu2 %v653_v40 }
 0x2b4   : > { %v560_v43 = vpop.f32.mrf.mxu0  ;;  %v609_v44 = vpop.f32.mrf.mxu1 }
 0x2b5   : > { %v561_v45 = vadd.f32 %v560_v43, %v1979_v18  ;;  %v610_v46 = vadd.f32 %v609_v44, %v1981_v19 }
 0x2b7   : > { %v656_v48 = vmax.f32 %v561_v45, %v610_v46 }
 0x2b9   : > { %648 = vmax.xlane.f32.xlu2 %v647_v47  ;;  %657 = vmax.xlane.f32.xlu1 %v656_v48 }
 0x2bc   : > { %v562_v51 = vpop.f32.mrf.mxu0  ;;  %v611_v52 = vpop.f32.mrf.mxu1 }
 0x2bd   : > { %v563_v53 = vadd.f32 %v562_v51, %v1979_v18  ;;  %v612_v54 = vadd.f32 %v611_v52, %v1981_v19 }
 0x2bf   : > { %v659_v56 = vmax.f32 %v563_v53, %v612_v54 }
 0x2c1   : > { %633 = vmax.xlane.f32.xlu2 %v632_v55  ;;  %660 = vmax.xlane.f32.xlu1 %v659_v56 }
 0x2c9   : > { %627 = vmax.xlane.f32.xlu2 %v626_v61  ;;  %645 = vmax.xlane.f32.xlu1 %v644_v62 }
 0x2d1   : > { %621 = vmax.xlane.f32.xlu2 %v620_v13  ;;  %642 = vmax.xlane.f32.xlu1 %v641_v14 }
 0x2d9   : > { %615 = vmax.xlane.f32.xlu2 %v614_v21  ;;  %636 = vmax.xlane.f32.xlu1 %v635_v24 }
 0x2e1   : > { %630 = vmax.xlane.f32.xlu1 %v629_v15 }
 0x2e9   : > { %624 = vmax.xlane.f32.xlu1 %v623_v11 }
 0x2f1   : > { %618 = vmax.xlane.f32.xlu1 %v617_v7 }
 0x2fc   : > { %v640_v48 = vpop.xlane.xlu0 %639 }
 0x2fd   : > { %v678_v61 = vsub.f32 %v1984_v22, %v640_v48  ;;  %v679_v13 = vsub.f32 %v1987_v23, %v640_v48 }
 0x2ff   : > { %v726_v15 = vmul.f32 1.442695, %v678_v61  ;;  %v728_v23 = vmul.f32 1.442695, %v679_v13 }
 0x31c   : > { %v652_v27 = vpop.xlane.xlu2 %651 }
 0x31d   : > { %v686_v35 = vsub.f32 %v1992_v33, %v652_v27  ;;  %v687_v3 = vsub.f32 %v1995_v34, %v652_v27 }
 0x31f   : > { %v742_v19 = vmul.f32 1.442695, %v686_v35  ;;  %v744_v40 = vmul.f32 1.442695, %v687_v3 }
 0x324   : > { %v655_v28 = vpop.xlane.xlu2 %654 }
 0x325   : > { %v689_v33 = vsub.f32 %v2003_v39, %v655_v28 }
 0x327   : > { %v748_v55 = vmul.f32 1.442695, %v689_v33 }
 0x32c   : > { %v658_v8 = vpop.xlane.xlu1 %657  ;;  %v649_v18 = vpop.xlane.xlu2 %648 }
 0x32d   : > { %v690_v29 = vsub.f32 %v561_v45, %v658_v8  ;;  %v691_v30 = vsub.f32 %v610_v46, %v658_v8  ;;  %v688_v45 = vsub.f32 %v2000_v38, %v655_v28  ;;  %v684_v24 = vsub.f32 %v2008_v41, %v649_v18 }
 0x32f   : > { %v750_v31 = vmul.f32 1.442695, %v690_v29  ;;  %v752_v32 = vmul.f32 1.442695, %v691_v30  ;;  %v746_v52 = vmul.f32 1.442695, %v688_v45 }
 0x330   : > { %v738_v27 = vmul.f32 1.442695, %v684_v24 }
 0x331   : > { %1483 = vpow2.f32 %v750_v31 }
 0x332   : > { %1485 = vpow2.f32 %v752_v32 }
 0x333   : > { %1487 = vpow2.f32 %v742_v19 }
 0x334   : > { %v661_v4 = vpop.xlane.xlu1 %660  ;;  %1489 = vpow2.f32 %v744_v40  ;;  %v634_v38 = vpop.xlane.xlu2 %633 }
 0x335   : > { %v692_v36 = vsub.f32 %v563_v53, %v661_v4  ;;  %v693_v37 = vsub.f32 %v612_v54, %v661_v4  ;;  %v675_v29 = vsub.f32 %v2021_v50, %v634_v38 }
 0x337   : > { %v754_v43 = vmul.f32 1.442695, %v692_v36  ;;  %v756_v44 = vmul.f32 1.442695, %v693_v37  ;;  %v2113_v47 = vpop.eup %1483  ;;  %v720_v19 = vmul.f32 1.442695, %v675_v29 }
 0x338   : > { %v2116_v46 = vpop.eup %1485 }
 0x339   : > { %1491 = vpow2.f32 %v754_v43  ;;  %v800_v34 = vadd.f32 %v2116_v46, %v2113_v47  ;;  %v2123_v56 = vpop.eup %1487 }
 0x33a   : > { %1493 = vpow2.f32 %v756_v44  ;;  %v2126_v62 = vpop.eup %1489 }
 0x33b   : > { %801 = vadd.xlane.f32.xlu2 %v800_v34  ;;  %1495 = vpow2.f32 %v746_v52  ;;  %v794_v22 = vadd.f32 %v2126_v62, %v2123_v56 }
 0x33c   : > { %v646_v51 = vpop.xlane.xlu1 %645  ;;  %1497 = vpow2.f32 %v748_v55  ;;  %v628_v30 = vpop.xlane.xlu2 %627 }
 0x33d   : > { %v682_v53 = vsub.f32 %v2034_v59, %v646_v51  ;;  %v683_v54 = vsub.f32 %v2037_v60, %v646_v51  ;;  %v685_v60 = vsub.f32 %v2011_v42, %v649_v18  ;;  %v674_v42 = vsub.f32 %v2018_v49, %v634_v38 }
 0x33e   : > { %v671_v45 = vsub.f32 %v2031_v58, %v628_v30 }
 0x33f   : > { %v734_v39 = vmul.f32 1.442695, %v682_v53  ;;  %v736_v14 = vmul.f32 1.442695, %v683_v54  ;;  %v2129_v21 = vpop.eup %1491  ;;  %v740_v41 = vmul.f32 1.442695, %v685_v60 }
 0x340   : > { %v2132_v59 = vpop.eup %1493  ;;  %v718_v18 = vmul.f32 1.442695, %v674_v42 }
 0x341   : > { %1499 = vpow2.f32 %v734_v39  ;;  %v803_v11 = vadd.f32 %v2132_v59, %v2129_v21  ;;  %v2139_v28 = vpop.eup %1495 }
 0x342   : > { %1501 = vpow2.f32 %v736_v14  ;;  %v2142_v8 = vpop.eup %1497 }
 0x343   : > { %795 = vadd.xlane.f32.xlu2 %v794_v22  ;;  %804 = vadd.xlane.f32.xlu1 %v803_v11  ;;  %1503 = vpow2.f32 %v726_v15  ;;  %v797_v49 = vadd.f32 %v2142_v8, %v2139_v28 }
 0x344   : > { %v643_v7 = vpop.xlane.xlu1 %642  ;;  %1505 = vpow2.f32 %v728_v23  ;;  %v622_v34 = vpop.xlane.xlu2 %621 }
 0x345   : > { %1507 = vpow2.f32 %v738_v27  ;;  %v680_v32 = vsub.f32 %v2052_v9, %v643_v7  ;;  %v681_v3 = vsub.f32 %v2055_v10, %v643_v7  ;;  %v670_v10 = vsub.f32 %v2028_v57, %v628_v30 }
 0x346   : > { %1509 = vpow2.f32 %v740_v41  ;;  %v712_v57 = vmul.f32 1.442695, %v671_v45  ;;  %v667_v13 = vsub.f32 %v2049_v2, %v622_v34 }
 0x347   : > { %v2145_v31 = vpop.eup %1499  ;;  %v730_v37 = vmul.f32 1.442695, %v680_v32  ;;  %v732_v40 = vmul.f32 1.442695, %v681_v3  ;;  %1511 = vpow2.f32 %v718_v18  ;;  %v710_v51 = vmul.f32 1.442695, %v670_v10 }
 0x348   : > { %v2148_v35 = vpop.eup %1501  ;;  %1513 = vpow2.f32 %v720_v19  ;;  %v704_v11 = vmul.f32 1.442695, %v667_v13 }
 0x349   : > { %v788_v4 = vadd.f32 %v2148_v35, %v2145_v31  ;;  %v2155_v36 = vpop.eup %1503  ;;  %1515 = vpow2.f32 %v730_v37 }
 0x34a   : > { %v2157_v9 = vpop.eup %1505  ;;  %1517 = vpow2.f32 %v732_v40 }
 0x34b   : > { %798 = vadd.xlane.f32.xlu1 %v797_v49  ;;  %789 = vadd.xlane.f32.xlu2 %v788_v4  ;;  %v2159_v43 = vpop.eup %1507  ;;  %v782_v53 = vadd.f32 %v2157_v9, %v2155_v36  ;;  %1519 = vpow2.f32 %v710_v51 }
 0x34c   : > { %v637_v50 = vpop.xlane.xlu1 %636  ;;  %v2162_v44 = vpop.eup %1509  ;;  %1521 = vpow2.f32 %v712_v57 }
 0x34d   : > { %v676_v33 = vsub.f32 %v2071_v17, %v637_v50  ;;  %v677_v48 = vsub.f32 %v2075_v20, %v637_v50  ;;  %v791_v52 = vadd.f32 %v2162_v44, %v2159_v43  ;;  %v2171_v55 = vpop.eup %1511  ;;  %v666_v20 = vsub.f32 %v2045_v63, %v622_v34  ;;  %v616_v63 = vpop.xlane.xlu2 %615 }
 0x34e   : > { %v2173_v58 = vpop.eup %1513  ;;  %v663_v29 = vsub.f32 %v2067_v6, %v616_v63 }
 0x34f   : > { %v722_v38 = vmul.f32 1.442695, %v676_v33  ;;  %v724_v17 = vmul.f32 1.442695, %v677_v48  ;;  %v2175_v61 = vpop.eup %1515  ;;  %v702_v60 = vmul.f32 1.442695, %v666_v20  ;;  %v776_v22 = vadd.f32 %v2173_v58, %v2171_v55 }
 0x350   : > { %v2178_v39 = vpop.eup %1517  ;;  %v696_v4 = vmul.f32 1.442695, %v663_v29 }
 0x351   : > { %1523 = vpow2.f32 %v722_v38  ;;  %v785_v15 = vadd.f32 %v2178_v39, %v2175_v61  ;;  %v2187_v7 = vpop.eup %1519 }
 0x352   : > { %1525 = vpow2.f32 %v724_v17  ;;  %v2189_v2 = vpop.eup %1521 }
 0x353   : > { %792 = vadd.xlane.f32.xlu1 %v791_v52  ;;  %783 = vadd.xlane.f32.xlu2 %v782_v53  ;;  %1527 = vpow2.f32 %v702_v60  ;;  %v770_v49 = vadd.f32 %v2189_v2, %v2187_v7 }
 0x354   : > { %v631_v54 = vpop.xlane.xlu1 %630  ;;  %1529 = vpow2.f32 %v704_v11 }
 0x355   : > { %v672_v14 = vsub.f32 %v2083_v0, %v631_v54  ;;  %v673_v24 = vsub.f32 %v2087_v1, %v631_v54  ;;  %v662_v1 = vsub.f32 %v2063_v5, %v616_v63 }
 0x357   : > { %v714_v27 = vmul.f32 1.442695, %v672_v14  ;;  %v716_v0 = vmul.f32 1.442695, %v673_v24  ;;  %v2191_v41 = vpop.eup %1523  ;;  %v694_v3 = vmul.f32 1.442695, %v662_v1 }
 0x358   : > { %v2194_v42 = vpop.eup %1525 }
 0x359   : > { %1531 = vpow2.f32 %v714_v27  ;;  %v779_v18 = vadd.f32 %v2194_v42, %v2191_v41  ;;  %v2203_v5 = vpop.eup %1527 }
 0x35a   : > { %1533 = vpow2.f32 %v716_v0  ;;  %v2205_v6 = vpop.eup %1529 }
 0x35b   : > { %786 = vadd.xlane.f32.xlu1 %v785_v15  ;;  %777 = vadd.xlane.f32.xlu2 %v776_v22  ;;  %1535 = vpow2.f32 %v694_v3  ;;  %v764_v33 = vadd.f32 %v2205_v6, %v2203_v5 }
 0x35c   : > { %v625_v23 = vpop.xlane.xlu1 %624  ;;  %1537 = vpow2.f32 %v696_v4 }
 0x35d   : > { %v668_v30 = vsub.f32 %v2093_v16, %v625_v23  ;;  %v669_v32 = vsub.f32 %v2097_v25, %v625_v23 }
 0x35f   : > { %v706_v19 = vmul.f32 1.442695, %v668_v30  ;;  %v708_v50 = vmul.f32 1.442695, %v669_v32  ;;  %v2207_v37 = vpop.eup %1531 }
 0x360   : > { %v2209_v25 = vpop.eup %1533 }
 0x361   : > { %1539 = vpow2.f32 %v706_v19  ;;  %v773_v45 = vadd.f32 %v2209_v25, %v2207_v37  ;;  %v2217_v34 = vpop.eup %1535 }
 0x362   : > { %1541 = vpow2.f32 %v708_v50  ;;  %v2219_v51 = vpop.eup %1537 }
 0x363   : > { %780 = vadd.xlane.f32.xlu1 %v779_v18  ;;  %771 = vadd.xlane.f32.xlu2 %v770_v49  ;;  %v758_v57 = vadd.f32 %v2219_v51, %v2217_v34 }
 0x364   : > { %v619_v16 = vpop.xlane.xlu1 %618 }
 0x365   : > { %v664_v40 = vsub.f32 %v2103_v12, %v619_v16  ;;  %v665_v10 = vsub.f32 %v2107_v26, %v619_v16 }
 0x367   : > { %v698_v48 = vmul.f32 1.442695, %v664_v40  ;;  %v700_v52 = vmul.f32 1.442695, %v665_v10  ;;  %v2221_v53 = vpop.eup %1539 }
 0x368   : > { %v2223_v12 = vpop.eup %1541 }
 0x369   : > { %1543 = vpow2.f32 %v698_v48  ;;  %v767_v26 = vadd.f32 %v2223_v12, %v2221_v53 }
 0x36a   : > { %1545 = vpow2.f32 %v700_v52 }
 0x36b   : > { %774 = vadd.xlane.f32.xlu1 %v773_v45  ;;  %765 = vadd.xlane.f32.xlu2 %v764_v33 }
 0x36f   : > { %v2229_v54 = vpop.eup %1543 }
 0x370   : > { %v2231_v38 = vpop.eup %1545 }
 0x371   : > { %v761_v17 = vadd.f32 %v2231_v38, %v2229_v54 }
 0x373   : > { %768 = vadd.xlane.f32.xlu1 %v767_v26  ;;  %759 = vadd.xlane.f32.xlu2 %v758_v57 }
 0x37b   : > { %762 = vadd.xlane.f32.xlu1 %v761_v17 }
 0x3ae   : > { %v802_v20 = vpop.xlane.xlu2 %801 }
 0x3af   : > { %1547 = vrcp.f32 %v802_v20  ;;  %v1011_v32 = vand.u32 2147483647, %v802_v20  ;;  %v1013_v3 = vand.u32 2147483648, %v802_v20  ;;  %vm1007_vm11 = vweird.f32 %v802_v20 }
 0x3b1   : > { %vm1012_vm14 = vcmp.eq.f32.partialorder %v1011_v32, 8.507059e+37  ;;  %v1014_v33 = vor.u32 1.1754944e-38, %v1013_v3 }
 0x3b5   : > { %v1548_v13 = vpop.eup %1547 }
 0x3b6   : > { %v1003_v14 = vmul.f32 %v1548_v13, %v802_v20  ;;  %v796_v24 = vpop.xlane.xlu2 %795  ;;  %v805_v60 = vpop.xlane.xlu1 %804  ;;  %vm1008_vm10 = vweird.f32 %v1548_v13 }
 0x3b7   : > { %1549 = vrcp.f32 %v796_v24  ;;  %v985_v18 = vand.u32 2147483648, %v796_v24  ;;  %v1025_v4 = vand.u32 2147483647, %v805_v60  ;;  %vm2244_vm12 = vmor %vm1007_vm11, %vm1008_vm10  ;;  %v1027_v50 = vand.u32 2147483648, %v805_v60 }
 0x3b8   : > { %v1004_v15 = vsub.f32 1.0, %v1003_v14  ;;  %1551 = vrcp.f32 %v805_v60  ;;  %v983_v16 = vand.u32 2147483647, %v796_v24  ;;  %vm979_vm13 = vweird.f32 %v796_v24 }
 0x3b9   : > { %vm1021_vm15 = vweird.f32 %v805_v60  ;;  %vm2253_vm1 = vcmp.eq.f32.partialorder %v1025_v4, 8.507059e+37  ;;  %v986_v57 = vor.u32 1.1754944e-38, %v985_v18 }
 0x3ba   : > { %v1005_v22 = vmul.f32 %v1548_v13, %v1004_v15  ;;  %vm2265_vm2 = vcmp.eq.f32.partialorder %v983_v16, 8.507059e+37 }
 0x3bc   : > { %v1006_v29 = vadd.f32 %v1548_v13, %v1005_v22  ;;  %v1028_v22 = vor.u32 1.1754944e-38, %v1027_v50 }
 0x3bd   : > { %v2235_v11 = vpop.eup %1549 }
 0x3be   : > { %v1552_v63 = vpop.eup %1551  ;;  %v975_v23 = vmul.f32 %v2235_v11, %v796_v24  ;;  %v2238_v27 = vpop.xlane.xlu2 %789  ;;  %v1010_v45 = vsel %vm2244_vm12, %v1548_v13, %v1006_v29  ;;  %vm980_vm3 = vweird.f32 %v2235_v11 }
 0x3bf   : > { %v2240_v0 = vpop.xlane.xlu1 %798  ;;  %v1017_v1 = vmul.f32 %v1552_v63, %v805_v60  ;;  %1553 = vrcp.f32 %v2238_v27  ;;  %vm1022_vm0 = vweird.f32 %v1552_v63  ;;  %v1015_v15 = vsel %vm1012_vm14, %v1014_v33, %v1010_v45  ;;  %vm2286_vm5 = vmor %vm979_vm13, %vm980_vm3 }
 0x3c0   : > { %v976_v30 = vsub.f32 1.0, %v975_v23  ;;  %1555 = vrcp.f32 %v2240_v0  ;;  %v999_v32 = vand.u32 2147483648, %v2240_v0  ;;  %vm1023_vm4 = vmor %vm1021_vm15, %vm1022_vm0  ;;  %v997_v3 = vand.u32 2147483647, %v2240_v0 }
 0x3c1   : > { %v1018_v49 = vsub.f32 1.0, %v1017_v1  ;;  %v957_v18 = vand.u32 2147483648, %v2238_v27  ;;  %v1058_v19 = vmul.f32 %v2113_v47, %v1015_v15  ;;  %v955_v60 = vand.u32 2147483647, %v2238_v27 }
 0x3c2   : > { %v977_v40 = vmul.f32 %v2235_v11, %v976_v30  ;;  %vm951_vm6 = vweird.f32 %v2238_v27  ;;  %vm993_vm7 = vweird.f32 %v2240_v0  ;;  %vm2299_vm8 = vcmp.eq.f32.partialorder %v997_v3, 8.507059e+37 }
 0x3c3   : > { %v1019_v10 = vmul.f32 %v1552_v63, %v1018_v49  ;;  %v1000_v24 = vor.u32 1.1754944e-38, %v999_v32  ;;  %vm2322_vm11 = vcmp.eq.f32.partialorder %v955_v60, 8.507059e+37  ;;  %v958_v3 = vor.u32 1.1754944e-38, %v957_v18 }
 0x3c4   : > { %v978_v29 = vadd.f32 %v2235_v11, %v977_v40  ;;  %v1059_v40 = vmul.f32 %v2116_v46, %v1015_v15 }
 0x3c5   : > { %v2251_v48 = vpop.eup %1553  ;;  %v1020_v52 = vadd.f32 %v1552_v63, %v1019_v10 }
 0x3c6   : > { %v2257_v17 = vpop.eup %1555  ;;  %v947_v20 = vmul.f32 %v2251_v48, %v2238_v27  ;;  %v2263_v13 = vpop.xlane.xlu2 %783  ;;  %v982_v33 = vsel %vm2286_vm5, %v2235_v11, %v978_v29  ;;  %vm952_vm10 = vweird.f32 %v2251_v48 }
 0x3c7   : > { %v2261_v14 = vpop.xlane.xlu1 %792  ;;  %v989_v1 = vmul.f32 %v2257_v17, %v2240_v0  ;;  %v1024_v4 = vsel %vm1023_vm4, %v1552_v63, %v1020_v52  ;;  %vm994_vm9 = vweird.f32 %v2257_v17  ;;  %vm2340_vm13 = vmor %vm951_vm6, %vm952_vm10  ;;  %vm923_vm0 = vweird.f32 %v2263_v13 }
 0x3c8   : > { %1557 = vrcp.f32 %v2261_v14  ;;  %v948_v30 = vsub.f32 1.0, %v947_v20  ;;  %v1029_v16 = vsel %vm2253_vm1, %v1028_v22, %v1024_v4  ;;  %v971_v23 = vand.u32 2147483648, %v2261_v14  ;;  %vm995_vm12 = vmor %vm993_vm7, %vm994_vm9 }
 0x3c9   : > { %1559 = vrcp.f32 %v2263_v13  ;;  %v990_v49 = vsub.f32 1.0, %v989_v1  ;;  %v1060_v63 = vmul.f32 %v2129_v21, %v1029_v16  ;;  %v1061_v47 = vmul.f32 %v2132_v59, %v1029_v16 }
 0x3ca   : > { %v949_v50 = vmul.f32 %v2251_v48, %v948_v30  ;;  %v987_v1 = vsel %vm2265_vm2, %v986_v57, %v982_v33  ;;  %v929_v57 = vand.u32 2147483648, %v2263_v13  ;;  %v969_v10 = vand.u32 2147483647, %v2261_v14 }
 0x3cb   : > { %v991_v45 = vmul.f32 %v2257_v17, %v990_v49  ;;  %v1080_v26 = vpack.c.bf16 %v1060_v63, %v1058_v19  ;;  %v1081_v20 = vpack.c.bf16 %v1061_v47, %v1059_v40  ;;  %v1055_v16 = vmul.f32 %v2126_v62, %v987_v1 }
 0x3cc   : > { %v950_v29 = vadd.f32 %v2251_v48, %v949_v50  ;;  %v1054_v50 = vmul.f32 %v2123_v56, %v987_v1  ;;  %vm965_vm15 = vweird.f32 %v2261_v14  ;;  %vm970_vm3 = vcmp.eq.f32.partialorder %v969_v10, 8.507059e+37 }
 0x3cd   : > { %v992_v21 = vadd.f32 %v2257_v17, %v991_v45  ;;  %1102 = vmatpush.bf16.xpose.msra.mxu2 %v1080_v26  ;;  %1121 = vmatpush.bf16.xpose.msra.mxu3 %v1081_v20  ;;  %v972_v45 = vor.u32 1.1754944e-38, %v971_v23  ;;  %v930_v1 = vor.u32 1.1754944e-38, %v929_v57 }
 0x3ce   : > { %v2303_v52 = vpop.eup %1557  ;;  %v2313_v22 = vpop.xlane.xlu2 %777 }
 0x3cf   : > { %v2307_v59 = vpop.eup %1559  ;;  %v961_v11 = vmul.f32 %v2303_v52, %v2261_v14  ;;  %v2311_v15 = vpop.xlane.xlu1 %786  ;;  %v996_v19 = vsel %vm995_vm12, %v2257_v17, %v992_v21  ;;  %v954_v17 = vsel %vm2340_vm13, %v2251_v48, %v950_v29  ;;  %vm966_vm14 = vweird.f32 %v2303_v52 }
 0x3d0   : > { %v919_v30 = vmul.f32 %v2307_v59, %v2263_v13  ;;  %1561 = vrcp.f32 %v2311_v15  ;;  %v1001_v0 = vsel %vm2299_vm8, %v1000_v24, %v996_v19  ;;  %v959_v33 = vsel %vm2322_vm11, %v958_v3, %v954_v17  ;;  %vm2362_vm1 = vmor %vm965_vm15, %vm966_vm14 }
 0x3d1   : > { %v962_v49 = vsub.f32 1.0, %v961_v11  ;;  %1563 = vrcp.f32 %v2313_v22  ;;  %v1056_v62 = vmul.f32 %v2139_v28, %v1001_v0  ;;  %v1057_v27 = vmul.f32 %v2142_v8, %v1001_v0 }
 0x3d2   : > { %v920_v4 = vsub.f32 1.0, %v919_v30  ;;  %v927_v8 = vand.u32 2147483647, %v2263_v13  ;;  %vm924_vm2 = vweird.f32 %v2307_v59  ;;  %v943_v30 = vand.u32 2147483648, %v2311_v15 }
 0x3d3   : > { %v963_v40 = vmul.f32 %v2303_v52, %v962_v49  ;;  %v1078_v48 = vpack.c.bf16 %v1056_v62, %v1054_v50  ;;  %v1079_v47 = vpack.c.bf16 %v1057_v27, %v1055_v16  ;;  %v1051_v49 = vmul.f32 %v2148_v35, %v959_v33  ;;  %vm2389_vm4 = vmor %vm923_vm0, %vm924_vm2 }
 0x3d4   : > { %v921_v56 = vmul.f32 %v2307_v59, %v920_v4  ;;  %vm937_vm6 = vweird.f32 %v2311_v15  ;;  %vm928_vm7 = vcmp.eq.f32.partialorder %v927_v8, 8.507059e+37  ;;  %v941_v13 = vand.u32 2147483647, %v2311_v15 }
 0x3d5   : > { %v964_v60 = vadd.f32 %v2303_v52, %v963_v40  ;;  %1103 = vmatpush.bf16.xpose.msra.mxu2 %v1078_v48  ;;  %1122 = vmatpush.bf16.xpose.msra.mxu3 %v1079_v47  ;;  %vm895_vm8 = vweird.f32 %v2313_v22  ;;  %v944_v0 = vor.u32 1.1754944e-38, %v943_v30 }
 0x3d6   : > { %v2358_v63 = vpop.eup %1561  ;;  %v2373_v26 = vpop.xlane.xlu2 %771  ;;  %v922_v21 = vadd.f32 %v2307_v59, %v921_v56  ;;  %vm942_vm11 = vcmp.eq.f32.partialorder %v941_v13, 8.507059e+37 }
 0x3d7   : > { %v2367_v46 = vpop.eup %1563  ;;  %v933_v14 = vmul.f32 %v2358_v63, %v2311_v15  ;;  %v2371_v24 = vpop.xlane.xlu1 %780  ;;  %v968_v20 = vsel %vm2362_vm1, %v2303_v52, %v964_v60  ;;  %v1050_v52 = vmul.f32 %v2145_v31, %v959_v33  ;;  %vm938_vm5 = vweird.f32 %v2358_v63 }
 0x3d8   : > { %v891_v11 = vmul.f32 %v2367_v46, %v2313_v22  ;;  %1565 = vrcp.f32 %v2371_v24  ;;  %v973_v3 = vsel %vm970_vm3, %v972_v45, %v968_v20  ;;  %v926_v31 = vsel %vm2389_vm4, %v2307_v59, %v922_v21  ;;  %vm2410_vm9 = vmor %vm937_vm6, %vm938_vm5 }
 0x3d9   : > { %v934_v29 = vsub.f32 1.0, %v933_v14  ;;  %1567 = vrcp.f32 %v2373_v26  ;;  %v1052_v4 = vmul.f32 %v2159_v43, %v973_v3  ;;  %v1053_v19 = vmul.f32 %v2162_v44, %v973_v3 }
 0x3da   : > { %v892_v32 = vsub.f32 1.0, %v891_v11  ;;  %v901_v44 = vand.u32 2147483648, %v2313_v22  ;;  %v931_v40 = vsel %vm928_vm7, %v930_v1, %v926_v31  ;;  %v899_v15 = vand.u32 2147483647, %v2313_v22 }
 0x3db   : > { %v935_v57 = vmul.f32 %v2358_v63, %v934_v29  ;;  %v1076_v50 = vpack.c.bf16 %v1052_v4, %v1050_v52  ;;  %v1077_v16 = vpack.c.bf16 %v1053_v19, %v1051_v49  ;;  %vm896_vm10 = vweird.f32 %v2367_v46 }
 0x3dc   : > { %v893_v35 = vmul.f32 %v2367_v46, %v892_v32  ;;  %v915_v45 = vand.u32 2147483648, %v2371_v24  ;;  %v1046_v33 = vmul.f32 %v2155_v36, %v931_v40  ;;  %vm2437_vm12 = vmor %vm895_vm8, %vm896_vm10  ;;  %v913_v20 = vand.u32 2147483647, %v2371_v24 }
 0x3dd   : > { %v936_v18 = vadd.f32 %v2358_v63, %v935_v57  ;;  %1104 = vmatpush.bf16.xpose.msra.mxu2 %v1076_v50  ;;  %1123 = vmatpush.bf16.xpose.msra.mxu3 %v1077_v16  ;;  %vm909_vm14 = vweird.f32 %v2371_v24  ;;  %vm900_vm15 = vcmp.eq.f32.partialorder %v899_v15, 8.507059e+37  ;;  %v902_v1 = vor.u32 1.1754944e-38, %v901_v44 }
 0x3de   : > { %v2405_v43 = vpop.eup %1565  ;;  %v2421_v27 = vpop.xlane.xlu2 %765  ;;  %v894_v60 = vadd.f32 %v2367_v46, %v893_v35  ;;  %vm867_vm0 = vweird.f32 %v2373_v26  ;;  %vm2460_vm2 = vcmp.eq.f32.partialorder %v913_v20, 8.507059e+37  ;;  %v916_v3 = vor.u32 1.1754944e-38, %v915_v45 }
 0x3df   : > { %v2415_v17 = vpop.eup %1567  ;;  %v905_v56 = vmul.f32 %v2405_v43, %v2371_v24  ;;  %v2419_v62 = vpop.xlane.xlu1 %774  ;;  %v940_v10 = vsel %vm2410_vm9, %v2358_v63, %v936_v18  ;;  %v1047_v63 = vmul.f32 %v2157_v9, %v931_v40  ;;  %vm910_vm13 = vweird.f32 %v2405_v43 }
 0x3e0   : > { %v863_v48 = vmul.f32 %v2415_v17, %v2373_v26  ;;  %1569 = vrcp.f32 %v2419_v62  ;;  %v945_v8 = vsel %vm942_vm11, %v944_v0, %v940_v10  ;;  %v898_v9 = vsel %vm2437_vm12, %v2367_v46, %v894_v60  ;;  %vm2456_vm1 = vmor %vm909_vm14, %vm910_vm13 }
 0x3e1   : > { %v906_v47 = vsub.f32 1.0, %v905_v56  ;;  %1571 = vrcp.f32 %v2421_v27  ;;  %v1048_v11 = vmul.f32 %v2175_v61, %v945_v8  ;;  %v1049_v36 = vmul.f32 %v2178_v39, %v945_v8 }
 0x3e2   : > { %v864_v28 = vsub.f32 1.0, %v863_v48  ;;  %v873_v61 = vand.u32 2147483648, %v2373_v26  ;;  %v903_v39 = vsel %vm900_vm15, %v902_v1, %v898_v9  ;;  %vm868_vm3 = vweird.f32 %v2415_v17 }
 0x3e3   : > { %v907_v21 = vmul.f32 %v2405_v43, %v906_v47  ;;  %v1074_v29 = vpack.c.bf16 %v1048_v11, %v1046_v33  ;;  %v1075_v30 = vpack.c.bf16 %v1049_v36, %v1047_v63  ;;  %v887_v35 = vand.u32 2147483648, %v2419_v62  ;;  %vm2488_vm4 = vmor %vm867_vm0, %vm868_vm3 }
 0x3e4   : > { %v865_v22 = vmul.f32 %v2415_v17, %v864_v28  ;;  %v871_v50 = vand.u32 2147483647, %v2373_v26  ;;  %v1042_v18 = vmul.f32 %v2171_v55, %v903_v39  ;;  %v885_v0 = vand.u32 2147483647, %v2419_v62 }
 0x3e5   : > { %v908_v52 = vadd.f32 %v2405_v43, %v907_v21  ;;  %1105 = vmatpush.bf16.xpose.msra.mxu2 %v1074_v29  ;;  %1124 = vmatpush.bf16.xpose.msra.mxu3 %v1075_v30  ;;  %vm881_vm6 = vweird.f32 %v2419_v62  ;;  %v874_v10 = vor.u32 1.1754944e-38, %v873_v61  ;;  %vm839_vm8 = vweird.f32 %v2421_v27 }
 0x3e6   : > { %v1570_v32 = vpop.eup %1569  ;;  %v2469_v4 = vpop.xlane.xlu2 %759  ;;  %v866_v31 = vadd.f32 %v2415_v17, %v865_v22  ;;  %vm872_vm7 = vcmp.eq.f32.partialorder %v871_v50, 8.507059e+37  ;;  %vm886_vm10 = vcmp.eq.f32.partialorder %v885_v0, 8.507059e+37  ;;  %v843_v14 = vand.u32 2147483647, %v2421_v27 }
 0x3e7   : > { %v2464_v49 = vpop.eup %1571  ;;  %v877_v23 = vmul.f32 %v1570_v32, %v2419_v62  ;;  %v2467_v57 = vpop.xlane.xlu1 %768  ;;  %v912_v19 = vsel %vm2456_vm1, %v2405_v43, %v908_v52  ;;  %v1043_v43 = vmul.f32 %v2173_v58, %v903_v39  ;;  %vm882_vm5 = vweird.f32 %v1570_v32 }
 0x3e8   : > { %v835_v13 = vmul.f32 %v2464_v49, %v2421_v27  ;;  %1573 = vrcp.f32 %v2467_v57  ;;  %v917_v40 = vsel %vm2460_vm2, %v916_v3, %v912_v19  ;;  %v870_v58 = vsel %vm2488_vm4, %v2415_v17, %v866_v31  ;;  %vm2503_vm9 = vmor %vm881_vm6, %vm882_vm5 }
 0x3e9   : > { %v878_v16 = vsub.f32 1.0, %v877_v23  ;;  %1575 = vrcp.f32 %v2469_v4  ;;  %v1044_v56 = vmul.f32 %v2191_v41, %v917_v40  ;;  %v1045_v55 = vmul.f32 %v2194_v42, %v917_v40  ;;  %v1360_v42 = vld [vmem:[#allocation4 + $0x4] sm:$0xf] }
 0x3ea   : > { %v836_v44 = vsub.f32 1.0, %v835_v13  ;;  %v845_v41 = vand.u32 2147483648, %v2421_v27  ;;  %v875_v33 = vsel %vm872_vm7, %v874_v10, %v870_v58  ;;  %v888_v17 = vor.u32 1.1754944e-38, %v887_v35 }
 0x3eb   : > { %v879_v15 = vmul.f32 %v1570_v32, %v878_v16  ;;  %v1072_v60 = vpack.c.bf16 %v1044_v56, %v1042_v18  ;;  %v1073_v45 = vpack.c.bf16 %v1045_v55, %v1043_v43  ;;  %vm840_vm11 = vweird.f32 %v2464_v49 }
 0x3ec   : > { %v837_v26 = vmul.f32 %v2464_v49, %v836_v44  ;;  %v859_v36 = vand.u32 2147483648, %v2467_v57  ;;  %v1038_v22 = vmul.f32 %v2187_v7, %v875_v33  ;;  %v1039_v30 = vmul.f32 %v2189_v2, %v875_v33  ;;  %vm2527_vm12 = vmor %vm839_vm8, %vm840_vm11  ;;  %v1361_v33 = vld [vmem:[#allocation4 + $0x4] sm:$0xf0] }
 0x3ed   : > { %v880_v48 = vadd.f32 %v1570_v32, %v879_v15  ;;  %1106 = vmatpush.bf16.xpose.msra.mxu2 %v1072_v60  ;;  %1125 = vmatpush.bf16.xpose.msra.mxu3 %v1073_v45  ;;  %v857_v39 = vand.u32 2147483647, %v2467_v57  ;;  %vm853_vm14 = vweird.f32 %v2467_v57  ;;  %vm844_vm15 = vcmp.eq.f32.partialorder %v843_v14, 8.507059e+37 }
 0x3ee   : > { %v1574_v47 = vpop.eup %1573  ;;  %v838_v21 = vadd.f32 %v2464_v49, %v837_v26  ;;  %v860_v3 = vor.u32 1.1754944e-38, %v859_v36  ;;  %vm811_vm2 = vweird.f32 %v2469_v4  ;;  %v815_v18 = vand.u32 2147483647, %v2469_v4 }
 0x3ef   : > { %v2507_v62 = vpop.eup %1575  ;;  %v849_v63 = vmul.f32 %v1574_v47, %v2467_v57  ;;  %v2510_v28 = vpop.xlane.xlu1 %762  ;;  %v884_v8 = vsel %vm2503_vm9, %v1570_v32, %v880_v48  ;;  %vm854_vm13 = vweird.f32 %v1574_v47  ;;  %vm858_vm1 = vcmp.eq.f32.partialorder %v857_v39, 8.507059e+37 }
 0x3f0   : > { %v807_v20 = vmul.f32 %v2507_v62, %v2469_v4  ;;  %1577 = vrcp.f32 %v2510_v28  ;;  %v889_v9 = vsel %vm886_vm10, %v888_v17, %v884_v8  ;;  %v842_v2 = vsel %vm2527_vm12, %v2464_v49, %v838_v21  ;;  %vm855_vm0 = vmor %vm853_vm14, %vm854_vm13  ;;  %v1334_v17 = vld [vmem:[#allocation4 + $0x8] sm:$0xf0] }
 0x3f1   : > { %v850_v11 = vsub.f32 1.0, %v849_v63  ;;  %v1040_v29 = vmul.f32 %v2207_v37, %v889_v9  ;;  %v1041_v52 = vmul.f32 %v2209_v25, %v889_v9  ;;  %v846_v37 = vor.u32 1.1754944e-38, %v845_v41  ;;  %v1332_v41 = vld [vmem:[#allocation4] sm:$0xf] }
 0x3f2   : > { %v808_v1 = vsub.f32 1.0, %v807_v20  ;;  %vm812_vm3 = vweird.f32 %v2507_v62  ;;  %v817_v57 = vand.u32 2147483648, %v2469_v4  ;;  %v831_v43 = vand.u32 2147483648, %v2510_v28  ;;  %v1579_v9 = vld [vmem:[%s1933_s22] sm:$0xff] }
 0x3f3   : > { %v851_v32 = vmul.f32 %v1574_v47, %v850_v11  ;;  %v1070_v7 = vpack.c.bf16 %v1040_v29, %v1038_v22  ;;  %v1071_v24 = vpack.c.bf16 %v1041_v52, %v1039_v30  ;;  %v847_v19 = vsel %vm844_vm15, %v846_v37, %v842_v2  ;;  %vm813_vm4 = vmor %vm811_vm2, %vm812_vm3  ;;  %v1581_v2 = vld [vmem:[%s1933_s22 + $0x20] sm:$0xff] }
 0x3f4   : > { %v809_v46 = vmul.f32 %v2507_v62, %v808_v1  ;;  %v1034_v44 = vmul.f32 %v2203_v5, %v847_v19  ;;  %v1035_v40 = vmul.f32 %v2205_v6, %v847_v19  ;;  %v829_v0 = vand.u32 2147483647, %v2510_v28  ;;  %v1582_v19 = vld [vmem:[%s1933_s22 + $0x30] sm:$0xff] }
 0x3f5   : > { %v852_v25 = vadd.f32 %v1574_v47, %v851_v32  ;;  %1107 = vmatpush.bf16.xpose.msra.mxu2 %v1070_v7  ;;  %1126 = vmatpush.bf16.xpose.msra.mxu3 %v1071_v24  ;;  %vm825_vm6 = vweird.f32 %v2510_v28  ;;  %vm816_vm7 = vcmp.eq.f32.partialorder %v815_v18, 8.507059e+37  ;;  %v1337_v63 = vor.u32 %v1360_v42, %v1334_v17  ;;  %v1580_v32 = vld [vmem:[%s1933_s22 + $0x10] sm:$0xff] }
 0x3f6   : > { %v1578_v27 = vpop.eup %1577  ;;  %v810_v35 = vadd.f32 %v2507_v62, %v809_v46  ;;  %vm830_vm9 = vcmp.eq.f32.partialorder %v829_v0, 8.507059e+37  ;;  %v1141_v21 = vstv %s1140_s27  ;;  %s1633_s27 = scalar_lea.hbm %s2621_s3, 128 }
 0x3f7   : > { %v821_v23 = vmul.f32 %v1578_v27, %v2510_v28  ;;  %v856_v31 = vsel %vm855_vm0, %v1574_v47, %v852_v25  ;;  %vm826_vm5 = vweird.f32 %v1578_v27  ;;  %v1362_v28 = vld [vmem:[#allocation4 + $0x14] sm:$0xf]  ;;  %p1635_p13 = scmp.lt.s32.totalorder %s1633_s27, %s1629_s17 }
 0x3f8   : > { %v861_v49 = vsel %vm858_vm1, %v860_v3, %v856_v31  ;;  %v814_v55 = vsel %vm813_vm4, %v2507_v62, %v810_v35  ;;  %vm827_vm8 = vmor %vm825_vm6, %vm826_vm5  ;;  %v1333_v62 = vor.u32 %v1361_v33, %v1332_v41 }
 0x3f9   : > { %v822_v13 = vsub.f32 1.0, %v821_v23  ;;  %v1036_v50 = vmul.f32 %v2221_v53, %v861_v49  ;;  %v1037_v16 = vmul.f32 %v2223_v12, %v861_v49  ;;  %v818_v53 = vor.u32 1.1754944e-38, %v817_v57  ;;  %p1636_p0 = por %p1635_p13, %p1634_p11 }
 0x3fa   : > { %v832_v12 = vor.u32 1.1754944e-38, %v831_v43 }
 0x3fb   : > { %v823_v59 = vmul.f32 %v1578_v27, %v822_v13  ;;  %v1068_v15 = vpack.c.bf16 %v1036_v50, %v1034_v44  ;;  %v1069_v56 = vpack.c.bf16 %v1037_v16, %v1035_v40  ;;  %v819_v5 = vsel %vm816_vm7, %v818_v53, %v814_v55  ;;  %p1637_p1 = pnand %p1636_p0, %p1632_p10 }
 0x3fc   : > { %v1030_v60 = vmul.f32 %v2217_v34, %v819_v5  ;;  %v1031_v45 = vmul.f32 %v2219_v51, %v819_v5  ;;  %v1342_v34 = vld [vmem:[#allocation4 + $0x18] sm:$0xf0] }
 0x3fd   : > { %v824_v58 = vadd.f32 %v1578_v27, %v823_v59  ;;  %1108 = vmatpush.bf16.xpose.msra.mxu2 %v1068_v15  ;;  %1127 = vmatpush.bf16.xpose.msra.mxu3 %v1069_v56  ;;  %v1345_v51 = vor.u32 %v1362_v28, %v1342_v34 }
 0x3ff   : > { %v828_v4 = vsel %vm827_vm8, %v1578_v27, %v824_v58 }
 0x400   : > { %v833_v6 = vsel %vm830_vm9, %v832_v12, %v828_v4 }
 0x401   : > { %v1032_v26 = vmul.f32 %v2229_v54, %v833_v6  ;;  %v1033_v10 = vmul.f32 %v2231_v38, %v833_v6  ;;  %v1340_v54 = vld [vmem:[#allocation4 + $0x10] sm:$0xf]  ;;  %v1363_v38 = vld [vmem:[#allocation4 + $0x14] sm:$0xf0] }
 0x402   : > { %v1341_v8 = vor.u32 %v1363_v38, %v1340_v54 }
 0x403   : > { %v1066_v48 = vpack.c.bf16 %v1032_v26, %v1030_v60  ;;  %v1067_v47 = vpack.c.bf16 %v1033_v10, %v1031_v45 }
 0x405   : > { %1109 = vmatpush.bf16.xpose.msra.mxu2 %v1066_v48  ;;  %1128 = vmatpush.bf16.xpose.msra.mxu3 %v1067_v47 }
 0x40c   : > { %1110 = vmatmul.bf16.vlgmr.msra.gmra.mxu2 %v1333_v62  ;;  %1129 = vmatmul.bf16.vlgmr.msra.gmra.mxu3 %v1337_v63 }
 0x41c   : > { %1115 = vmatmul.bf16.gmra.mxu2 %v1341_v8  ;;  %1134 = vmatmul.bf16.gmra.mxu3 %v1345_v51 }
 0x48f   : > { %v1111_v14 = vpop.f32.mrf.mxu2  ;;  %v1130_v20 = vpop.f32.mrf.mxu3 }
 0x490   : > { %v1131_v11 = vadd.f32 %v1130_v20, %v1111_v14 }
 0x492   : > { %v1142_v36 = vmul.f32 %v1141_v21, %v1131_v11 }
 0x494   : > { %v1146_v22 = vadd.f32 %v1579_v9, %v1142_v36 }
 0x496   : > { %1150 = vst [vmem:[%s1882_s26] sm:$0xff] %v1146_v22 }
 0x497   : > { %v1113_v1 = vpop.f32.mrf.mxu2  ;;  %v1132_v29 = vpop.f32.mrf.mxu3 }
 0x498   : > { %v1133_v30 = vadd.f32 %v1132_v29, %v1113_v1 }
 0x49a   : > { %v1143_v52 = vmul.f32 %v1141_v21, %v1133_v30 }
 0x49c   : > { %v1147_v61 = vadd.f32 %v1580_v32, %v1143_v52 }
 0x49e   : > { %1151 = vst [vmem:[%s1882_s26 + $0x8] sm:$0xff] %v1147_v61 }
 0x49f   : > { %v1116_v39 = vpop.f32.mrf.mxu2  ;;  %v1135_v46 = vpop.f32.mrf.mxu3 }
 0x4a0   : > { %v1136_v7 = vadd.f32 %v1135_v46, %v1116_v39 }
 0x4a2   : > { %v1144_v24 = vmul.f32 %v1141_v21, %v1136_v7 }
 0x4a4   : > { %v1148_v37 = vadd.f32 %v1581_v2, %v1144_v24 }
 0x4a6   : > { %1152 = vst [vmem:[%s1882_s26 + $0x10] sm:$0xff] %v1148_v37 }
 0x4a7   : > { %v1118_v25 = vpop.f32.mrf.mxu2  ;;  %v1137_v27 = vpop.f32.mrf.mxu3 }
 0x4a8   : > { %v1138_v3 = vadd.f32 %v1137_v27, %v1118_v25 }
 0x4aa   : > { %v1145_v23 = vmul.f32 %v1141_v21, %v1138_v3 }
 0x4ac   : > { %v1149_v31 = vadd.f32 %v1582_v19, %v1145_v23 }
 0x4ae   : > { %1153 = vst [vmem:[%s1882_s26 + $0x18] sm:$0xff] %v1149_v31 }
 0x4af   : > { %1640 = shalt.err (!%p1637_p1)
}
 0x4b0   : > { %s1740_s29 = smov 128   ;;  %s1741_s26 = smov 256  }
 0x4b1   : > { %s1742_s22 = smov 8  }
 0x4b2   : > { %1372 = dma.vmem_to_hbm [thread:$0]  (%p1848_p12), %s1169_s21, 512, %s1171_s4, %s1155_s20, %s1740_s29, %s1741_s26, %s1742_s22  }
 0x4b3 PF: > { %p1383_p4 = scmp.ge.s32.totalorder %s1735_s23, 2  ;;  %s1185_s6 = sand.u32 1, %s1695_s14  }
 0x4b4   : > { %s1186_s28 = scalar_lea.sflag [#allocation9], %s1185_s6 }
 0x4b5   : > { %p1379_p5 = pnand %p1383_p4, %p1861_p2 }
 0x4b7   : > { %p1380_p6 = pneg %p1379_p5 }
 0x4b9   : > { %1690 = dma.done.wait (%p1380_p6), %s1186_s28, 512  }
 0x4ba   : > { %1692 = vsyncadd (%p1380_p6), %s1186_s28, 4294966784  ;;  %s20_s23 = sadd.s32 1, %s1735_s23   ;;  %s2664_s21 = sld [smem:[#allocation13_spill]] }
 0x4bb   : > { %p17_p8 = scmp.ge.s32.totalorder %s20_s23, 6   ;;  %s2665_s8 = sld [smem:[#allocation14_spill]] }
 0x4bc   : > { %s2666_s22 = sld [smem:[#allocation15_spill]]  ;;  %s2667_s14 = smov %s1699_s15 }
 0x4bd   : > { %s2668_s15 = smov %s1703_s16  ;;  %s2669_s16 = smov %s1856_s10 }
 0x4be   : > { %s2670_s17 = smov %s1711_s18  ;;  %s2671_s18 = smov %s1715_s19 }
 0x4bf   : > { %s2672_s19 = smov %s1853_s9  ;;  %s2673_s20 = smov %s1727_s0 }
 0x4c0   :  { %19 = sbr.rel (!%p17_p8) target bundleno = 11 (0xb), region = 82 }
 0x4c1   : > { %s2674_s0 = smov %s2665_s8 }
 0x4c5   :  { %1192 = vsyncpa [#allocation8], 1 }
 0x4c6   :  { %1194 = vsyncpa [#allocation8 + $0x1], 1 }
 0x4c7   :  { %1195 = vsyncpa [#allocation9], 1 }
 0x4c8   :  { %1197 = vsyncpa [#allocation9 + $0x1], 1 }

</bundles_post_ra>
